<compile_context>
chip_gen: v7x
topology: tpu7x:2x2x1
jax: 0.10.0
libtpu: 0.0.40
codegen_flags: <defaults>
</compile_context>

<pallas_src>
import functools
import math

import jax
import jax.numpy as jnp
from jax.experimental import pallas as pl
from jax.experimental.pallas import tpu as pltpu

COUT_PAD = 128     # conv output channels padded to one full lane tile
CLASSES_PAD = 128  # classifier logits padded to one full lane tile


# ------------------------- Pallas kernel ---------------------------------

def fused_forward_kernel(x_ref, wconv_ref, scale_ref, shift_ref,
                         wlin_ref, blin_ref, out_ref, pooled_acc,
                         *, tile_h, width, cin, inv_hw):
    """Conv3x3 + BN + ReLU on one row tile; GAP + Linear fused in epilogue.

    Grid = (batch, row_tile).  x_ref is the full spatially-padded image of the
    current batch element (block index constant over the row-tile axis, so it
    is DMA'd once per batch and reused).  pooled_acc is a per-core VMEM
    accumulator of per-channel sums across row tiles.
    """
    t = pl.program_id(1)
    n_tiles = pl.num_programs(1)

    @pl.when(t == 0)
    def _init():
        pooled_acc[...] = jnp.zeros_like(pooled_acc)

    row0 = pl.multiple_of(t * tile_h, tile_h)

    # Conv as a sum of 9 shifted matmuls; the 9x im2col blow-up lives only in
    # VMEM / vregs, never in HBM.
    acc = jnp.zeros((tile_h * width, COUT_PAD), jnp.float32)
    for kh in range(3):
        xrows = x_ref[pl.ds(row0 + kh, tile_h), :, :]            # (TH, W+2, Cin) bf16
        for kw in range(3):
            xs = xrows[:, kw:kw + width, :]                      # (TH, W, Cin)
            xs = xs.reshape(tile_h * width, cin)                 # (TM, Cin)
            acc = acc + jnp.dot(xs, wconv_ref[kh * 3 + kw],
                                preferred_element_type=jnp.float32)

    # Fused BatchNorm (eval, folded to scale/shift) + ReLU on the VPU.
    y = jnp.maximum(acc * scale_ref[...] + shift_ref[...], 0.0)  # (TM, COUT_PAD)

    # Global-average-pool partial sum; channels stay on the lane axis so this
    # is a cheap sublane reduction.
    pooled_acc[...] += jnp.sum(y, axis=0, keepdims=True)

    @pl.when(t == n_tiles - 1)
    def _finalize():
        pooled = pooled_acc[...] * inv_hw                        # (1, COUT_PAD)
        logits = jnp.dot(pooled, wlin_ref[...],
                         preferred_element_type=jnp.float32) + blin_ref[...]
        out_ref[...] = logits                                    # (1, CLASSES_PAD)


# ------------------------- Wrapper ----------------------------------------

def model_forward(x_nchw, params, classes, *, tile_h=8):
    """Full forward. Input NCHW (PyTorch convention); returns [N, classes]."""
    N, cin, H, W = x_nchw.shape
    assert H % tile_h == 0, "H must be divisible by tile_h"
    Hp, Wp = H + 2, W + 2

    # NCHW -> NHWC, zero-pad spatially for the 3x3/pad=1 conv, cast to bf16
    # for the MXU (accumulation stays f32 inside the kernel).
    x_nhwc = jnp.transpose(x_nchw, (0, 2, 3, 1))
    x_pad = jnp.pad(x_nhwc, ((0, 0), (1, 1), (1, 1), (0, 0))).astype(jnp.bfloat16)

    w_conv = params["w_conv_taps"]        # (9, Cin, COUT_PAD) bf16
    bn_scale = params["bn_scale"]         # (1, COUT_PAD) f32
    bn_shift = params["bn_shift"]         # (1, COUT_PAD) f32
    w_lin = params["w_lin"]               # (COUT_PAD, CLASSES_PAD) f32
    b_lin = params["b_lin"]               # (1, CLASSES_PAD) f32

    grid = (N, H // tile_h)

    kernel = functools.partial(
        fused_forward_kernel,
        tile_h=tile_h, width=W, cin=cin, inv_hw=1.0 / (H * W))

    flops = 2 * N * H * W * (9 * cin) * COUT_PAD + 2 * N * COUT_PAD * CLASSES_PAD
    bytes_accessed = (
        x_pad.size * x_pad.dtype.itemsize
        + w_conv.size * w_conv.dtype.itemsize
        + (bn_scale.size + bn_shift.size + w_lin.size + b_lin.size) * 4
        + N * CLASSES_PAD * 4)

    out = pl.pallas_call(
        kernel,
        out_shape=jax.ShapeDtypeStruct((N, 1, CLASSES_PAD), jnp.float32),
        grid_spec=pltpu.PrefetchScalarGridSpec(
            num_scalar_prefetch=0,
            grid=grid,
            in_specs=[
                # Padded image of batch n; constant over the row-tile axis so
                # it is fetched once per batch element.
                pl.BlockSpec((None, Hp, Wp, cin), lambda n, t: (n, 0, 0, 0)),
                # Weights / BN vectors resident in VMEM across the whole grid.
                pl.BlockSpec((9, cin, COUT_PAD), lambda n, t: (0, 0, 0)),
                pl.BlockSpec((1, COUT_PAD), lambda n, t: (0, 0)),
                pl.BlockSpec((1, COUT_PAD), lambda n, t: (0, 0)),
                pl.BlockSpec((COUT_PAD, CLASSES_PAD), lambda n, t: (0, 0)),
                pl.BlockSpec((1, CLASSES_PAD), lambda n, t: (0, 0)),
            ],
            out_specs=pl.BlockSpec((None, 1, CLASSES_PAD), lambda n, t: (n, 0, 0)),
            scratch_shapes=[pltpu.VMEM((1, COUT_PAD), jnp.float32)],
        ),
        compiler_params=pltpu.CompilerParams(
            dimension_semantics=("parallel", "arbitrary"),
            vmem_limit_bytes=32 * 1024 * 1024,
        ),
        cost_estimate=pl.CostEstimate(
            flops=flops, transcendentals=0, bytes_accessed=bytes_accessed),
    )(x_pad, w_conv, bn_scale, bn_shift, w_lin, b_lin)

    return out[:, 0, :classes]


# ------------------------- Parameter init ---------------------------------

def init_params(key, cin, cout, classes):
    k_conv, k_lin = jax.random.split(key)

    # Conv2d: weight ~ N(0, sqrt(2 / (kh*kw*cout))), bias zero (PyTorch init).
    n = 3 * 3 * cout
    w_conv = jax.random.normal(k_conv, (cout, cin, 3, 3), jnp.float32) * math.sqrt(2.0 / n)
    b_conv = jnp.zeros((cout,), jnp.float32)

    # Repack (Cout, Cin, KH, KW) -> (KH*KW, Cin, Cout), zero-pad Cout -> 128,
    # cast to bf16 for the MXU.
    w_taps = jnp.transpose(w_conv, (2, 3, 1, 0)).reshape(9, cin, cout)
    w_taps = jnp.pad(w_taps, ((0, 0), (0, 0), (0, COUT_PAD - cout))).astype(jnp.bfloat16)

    # BatchNorm2d (eval): gamma=1, beta=0, running_mean=0, running_var=1.
    gamma = jnp.ones((cout,), jnp.float32)
    beta = jnp.zeros((cout,), jnp.float32)
    running_mean = jnp.zeros((cout,), jnp.float32)
    running_var = jnp.ones((cout,), jnp.float32)
    eps = 1e-5
    scale = gamma / jnp.sqrt(running_var + eps)
    shift = beta + (b_conv - running_mean) * scale
    bn_scale = jnp.pad(scale, (0, COUT_PAD - cout)).reshape(1, COUT_PAD)
    bn_shift = jnp.pad(shift, (0, COUT_PAD - cout)).reshape(1, COUT_PAD)

    # Linear: weight ~ N(0, 0.02) in PyTorch [classes, Cout] layout; bias 0.
    w_lin_t = jax.random.normal(k_lin, (classes, cout), jnp.float32) * 0.02
    w_lin = jnp.pad(jnp.transpose(w_lin_t),
                    ((0, COUT_PAD - cout), (0, CLASSES_PAD - classes)))
    b_lin = jnp.zeros((1, CLASSES_PAD), jnp.float32)

    return {
        # kernel operands (packed / padded)
        "w_conv_taps": w_taps,
        "bn_scale": bn_scale,
        "bn_shift": bn_shift,
        "w_lin": w_lin,
        "b_lin": b_lin,
        # raw copies for the pure-JAX reference
        "w_conv_oihw": w_conv,
        "bn_scale_raw": scale,
        "bn_shift_raw": shift,
        "w_lin_raw": w_lin_t,
    }


# ------------------------- Pure-JAX reference ------------------------------

def reference_forward(x_nchw, params, classes):
    conv = jax.lax.conv_general_dilated(
        x_nchw, params["w_conv_oihw"], window_strides=(1, 1),
        padding=((1, 1), (1, 1)),
        dimension_numbers=("NCHW", "OIHW", "NCHW"))
    scale = params["bn_scale_raw"][None, :, None, None]
    shift = params["bn_shift_raw"][None, :, None, None]
    y = jnp.maximum(conv * scale + shift, 0.0)
    pooled = jnp.mean(y, axis=(2, 3))                 # (N, Cout)
    return pooled @ params["w_lin_raw"].T             # linear bias is zero


# ------------------------- Main --------------------------------------------

if __name__ == "__main__":
    key = jax.random.PRNGKey(0)
    k_x, k_p = jax.random.split(key)

    N, Cin, H, W = 2, 4, 16, 16
    Cout, classes = 32, 10

    x = jax.random.normal(k_x, (N, Cin, H, W), jnp.float32)   # NCHW like PyTorch
    params = init_params(k_p, Cin, Cout, classes)

    out = model_forward(x, params, classes, tile_h=8)
    jax.block_until_ready(out)

    ref = reference_forward(x, params, classes)
    assert out.shape == (N, classes)
    assert bool(jnp.all(jnp.isfinite(out)))
    assert bool(jnp.allclose(out, ref, atol=1e-2, rtol=1e-2)), (out, ref)
    print("KERNEL_OK")
</pallas_src>

<mosaic_0001>
module attributes {stable_mosaic.version = 11 : i64} {
  func.func @fused_forward_kernel(%arg0: i32, %arg1: i32, %arg2: memref<1x18x18x4xbf16, #tpu.memory_space<vmem>>, %arg3: memref<9x4x128xbf16, #tpu.memory_space<vmem>>, %arg4: memref<1x128xf32, #tpu.memory_space<vmem>>, %arg5: memref<1x128xf32, #tpu.memory_space<vmem>>, %arg6: memref<128x128xf32, #tpu.memory_space<vmem>>, %arg7: memref<1x128xf32, #tpu.memory_space<vmem>>, %arg8: memref<1x1x128xf32, #tpu.memory_space<vmem>>, %arg9: memref<1x128xf32, #tpu.memory_space<vmem>>) attributes {dimension_semantics = [#tpu.dimension_semantics<parallel>, #tpu.dimension_semantics<arbitrary>], iteration_bounds = array<i64: 2, 2>, scalar_prefetch = 0 : i64, scratch_operands = 1 : i64, tpu.core_type = #tpu.core_type<tc>, window_params = [{transform_indices = @transform_0, window_bounds = array<i64: 1, 18, 18, 4>}, {pipeline_mode = #tpu.pipeline_mode<synchronous>, transform_indices = @transform_1, window_bounds = array<i64: 9, 4, 128>}, {pipeline_mode = #tpu.pipeline_mode<synchronous>, transform_indices = @transform_2, window_bounds = array<i64: 1, 128>}, {pipeline_mode = #tpu.pipeline_mode<synchronous>, transform_indices = @transform_3, window_bounds = array<i64: 1, 128>}, {pipeline_mode = #tpu.pipeline_mode<synchronous>, transform_indices = @transform_4, window_bounds = array<i64: 128, 128>}, {pipeline_mode = #tpu.pipeline_mode<synchronous>, transform_indices = @transform_5, window_bounds = array<i64: 1, 128>}, {transform_indices = @transform_6, window_bounds = array<i64: 1, 1, 128>}]} {
    %c0_i32 = arith.constant 0 : i32
    %0 = arith.cmpi eq, %arg1, %c0_i32 : i32
    %1 = arith.extui %0 : i1 to i32
    %c0_i32_0 = arith.constant 0 : i32
    %2 = arith.cmpi ne, %1, %c0_i32_0 : i32
    scf.if %2 {
      %cst_50 = arith.constant 0.000000e+00 : f32
      %88 = vector.broadcast %cst_50 : f32 to vector<1x128xf32>
      %c0_51 = arith.constant 0 : index
      %c0_52 = arith.constant 0 : index
      %89 = vector.load %arg9[%c0_51, %c0_52] : memref<1x128xf32, #tpu.memory_space<vmem>>, vector<1x128xf32>
      tpu.vector_store %arg9[%c0_51, %c0_52], %88 {strides = array<i32>} : memref<1x128xf32, #tpu.memory_space<vmem>>, vector<1x128xf32>,
    } else {
    }
    %c8_i32 = arith.constant 8 : i32
    %3 = arith.muli %arg1, %c8_i32 : i32
    %4 = tpu.assume_multiple %3, 8 : i32
    %cst = arith.constant 0.000000e+00 : f32
    %5 = vector.broadcast %cst : f32 to vector<128x128xf32>
    %c0_i32_1 = arith.constant 0 : i32
    %6 = arith.addi %4, %c0_i32_1 : i32
    %c0 = arith.constant 0 : index
    %7 = arith.index_cast %6 : i32 to index
    %c0_2 = arith.constant 0 : index
    %c0_3 = arith.constant 0 : index
    %8 = vector.load %arg2[%c0, %7, %c0_2, %c0_3] : memref<1x18x18x4xbf16, #tpu.memory_space<vmem>>, vector<1x8x18x4xbf16>
    %9 = vector.shape_cast %8 : vector<1x8x18x4xbf16> to vector<8x18x4xbf16>
    %10 = vector.extract_strided_slice %9 {offsets = [0, 0, 0], sizes = [8, 16, 4], strides = [1, 1, 1]} : vector<8x18x4xbf16> to vector<8x16x4xbf16>
    %11 = vector.shape_cast %10 : vector<8x16x4xbf16> to vector<128x4xbf16>
    %c0_4 = arith.constant 0 : index
    %c0_5 = arith.constant 0 : index
    %c0_6 = arith.constant 0 : index
    %12 = vector.load %arg3[%c0_4, %c0_5, %c0_6] : memref<9x4x128xbf16, #tpu.memory_space<vmem>>, vector<1x4x128xbf16>
    %13 = vector.shape_cast %12 : vector<1x4x128xbf16> to vector<4x128xbf16>
    %cst_7 = arith.constant dense<0.000000e+00> : vector<128x128xf32>
    %14 = tpu.matmul %11, %13, %cst_7 {dimension_numbers = #tpu.dot_dimension_numbers<[1], [0], [0], [1], [0, 0, 1, 1], [], []>} : vector<128x4xbf16>, vector<4x128xbf16>, vector<128x128xf32> -> vector<128x128xf32>
    %15 = arith.addf %5, %14 : vector<128x128xf32>
    %16 = vector.extract_strided_slice %9 {offsets = [0, 1, 0], sizes = [8, 16, 4], strides = [1, 1, 1]} : vector<8x18x4xbf16> to vector<8x16x4xbf16>
    %17 = vector.shape_cast %16 : vector<8x16x4xbf16> to vector<128x4xbf16>
    %c1 = arith.constant 1 : index
    %c0_8 = arith.constant 0 : index
    %c0_9 = arith.constant 0 : index
    %18 = vector.load %arg3[%c1, %c0_8, %c0_9] : memref<9x4x128xbf16, #tpu.memory_space<vmem>>, vector<1x4x128xbf16>
    %19 = vector.shape_cast %18 : vector<1x4x128xbf16> to vector<4x128xbf16>
    %cst_10 = arith.constant dense<0.000000e+00> : vector<128x128xf32>
    %20 = tpu.matmul %17, %19, %cst_10 {dimension_numbers = #tpu.dot_dimension_numbers<[1], [0], [0], [1], [0, 0, 1, 1], [], []>} : vector<128x4xbf16>, vector<4x128xbf16>, vector<128x128xf32> -> vector<128x128xf32>
    %21 = arith.addf %15, %20 : vector<128x128xf32>
    %22 = vector.extract_strided_slice %9 {offsets = [0, 2, 0], sizes = [8, 16, 4], strides = [1, 1, 1]} : vector<8x18x4xbf16> to vector<8x16x4xbf16>
    %23 = vector.shape_cast %22 : vector<8x16x4xbf16> to vector<128x4xbf16>
    %c2 = arith.constant 2 : index
    %c0_11 = arith.constant 0 : index
    %c0_12 = arith.constant 0 : index
    %24 = vector.load %arg3[%c2, %c0_11, %c0_12] : memref<9x4x128xbf16, #tpu.memory_space<vmem>>, vector<1x4x128xbf16>
    %25 = vector.shape_cast %24 : vector<1x4x128xbf16> to vector<4x128xbf16>
    %cst_13 = arith.constant dense<0.000000e+00> : vector<128x128xf32>
    %26 = tpu.matmul %23, %25, %cst_13 {dimension_numbers = #tpu.dot_dimension_numbers<[1], [0], [0], [1], [0, 0, 1, 1], [], []>} : vector<128x4xbf16>, vector<4x128xbf16>, vector<128x128xf32> -> vector<128x128xf32>
    %27 = arith.addf %21, %26 : vector<128x128xf32>
    %c1_i32 = arith.constant 1 : i32
    %28 = arith.addi %4, %c1_i32 : i32
    %c0_14 = arith.constant 0 : index
    %29 = arith.index_cast %28 : i32 to index
    %c0_15 = arith.constant 0 : index
    %c0_16 = arith.constant 0 : index
    %30 = vector.load %arg2[%c0_14, %29, %c0_15, %c0_16] : memref<1x18x18x4xbf16, #tpu.memory_space<vmem>>, vector<1x8x18x4xbf16>
    %31 = vector.shape_cast %30 : vector<1x8x18x4xbf16> to vector<8x18x4xbf16>
    %32 = vector.extract_strided_slice %31 {offsets = [0, 0, 0], sizes = [8, 16, 4], strides = [1, 1, 1]} : vector<8x18x4xbf16> to vector<8x16x4xbf16>
    %33 = vector.shape_cast %32 : vector<8x16x4xbf16> to vector<128x4xbf16>
    %c3 = arith.constant 3 : index
    %c0_17 = arith.constant 0 : index
    %c0_18 = arith.constant 0 : index
    %34 = vector.load %arg3[%c3, %c0_17, %c0_18] : memref<9x4x128xbf16, #tpu.memory_space<vmem>>, vector<1x4x128xbf16>
    %35 = vector.shape_cast %34 : vector<1x4x128xbf16> to vector<4x128xbf16>
    %cst_19 = arith.constant dense<0.000000e+00> : vector<128x128xf32>
    %36 = tpu.matmul %33, %35, %cst_19 {dimension_numbers = #tpu.dot_dimension_numbers<[1], [0], [0], [1], [0, 0, 1, 1], [], []>} : vector<128x4xbf16>, vector<4x128xbf16>, vector<128x128xf32> -> vector<128x128xf32>
    %37 = arith.addf %27, %36 : vector<128x128xf32>
    %38 = vector.extract_strided_slice %31 {offsets = [0, 1, 0], sizes = [8, 16, 4], strides = [1, 1, 1]} : vector<8x18x4xbf16> to vector<8x16x4xbf16>
    %39 = vector.shape_cast %38 : vector<8x16x4xbf16> to vector<128x4xbf16>
    %c4 = arith.constant 4 : index
    %c0_20 = arith.constant 0 : index
    %c0_21 = arith.constant 0 : index
    %40 = vector.load %arg3[%c4, %c0_20, %c0_21] : memref<9x4x128xbf16, #tpu.memory_space<vmem>>, vector<1x4x128xbf16>
    %41 = vector.shape_cast %40 : vector<1x4x128xbf16> to vector<4x128xbf16>
    %cst_22 = arith.constant dense<0.000000e+00> : vector<128x128xf32>
    %42 = tpu.matmul %39, %41, %cst_22 {dimension_numbers = #tpu.dot_dimension_numbers<[1], [0], [0], [1], [0, 0, 1, 1], [], []>} : vector<128x4xbf16>, vector<4x128xbf16>, vector<128x128xf32> -> vector<128x128xf32>
    %43 = arith.addf %37, %42 : vector<128x128xf32>
    %44 = vector.extract_strided_slice %31 {offsets = [0, 2, 0], sizes = [8, 16, 4], strides = [1, 1, 1]} : vector<8x18x4xbf16> to vector<8x16x4xbf16>
    %45 = vector.shape_cast %44 : vector<8x16x4xbf16> to vector<128x4xbf16>
    %c5 = arith.constant 5 : index
    %c0_23 = arith.constant 0 : index
    %c0_24 = arith.constant 0 : index
    %46 = vector.load %arg3[%c5, %c0_23, %c0_24] : memref<9x4x128xbf16, #tpu.memory_space<vmem>>, vector<1x4x128xbf16>
    %47 = vector.shape_cast %46 : vector<1x4x128xbf16> to vector<4x128xbf16>
    %cst_25 = arith.constant dense<0.000000e+00> : vector<128x128xf32>
    %48 = tpu.matmul %45, %47, %cst_25 {dimension_numbers = #tpu.dot_dimension_numbers<[1], [0], [0], [1], [0, 0, 1, 1], [], []>} : vector<128x4xbf16>, vector<4x128xbf16>, vector<128x128xf32> -> vector<128x128xf32>
    %49 = arith.addf %43, %48 : vector<128x128xf32>
    %c2_i32 = arith.constant 2 : i32
    %50 = arith.addi %4, %c2_i32 : i32
    %c0_26 = arith.constant 0 : index
    %51 = arith.index_cast %50 : i32 to index
    %c0_27 = arith.constant 0 : index
    %c0_28 = arith.constant 0 : index
    %52 = vector.load %arg2[%c0_26, %51, %c0_27, %c0_28] : memref<1x18x18x4xbf16, #tpu.memory_space<vmem>>, vector<1x8x18x4xbf16>
    %53 = vector.shape_cast %52 : vector<1x8x18x4xbf16> to vector<8x18x4xbf16>
    %54 = vector.extract_strided_slice %53 {offsets = [0, 0, 0], sizes = [8, 16, 4], strides = [1, 1, 1]} : vector<8x18x4xbf16> to vector<8x16x4xbf16>
    %55 = vector.shape_cast %54 : vector<8x16x4xbf16> to vector<128x4xbf16>
    %c6 = arith.constant 6 : index
    %c0_29 = arith.constant 0 : index
    %c0_30 = arith.constant 0 : index
    %56 = vector.load %arg3[%c6, %c0_29, %c0_30] : memref<9x4x128xbf16, #tpu.memory_space<vmem>>, vector<1x4x128xbf16>
    %57 = vector.shape_cast %56 : vector<1x4x128xbf16> to vector<4x128xbf16>
    %cst_31 = arith.constant dense<0.000000e+00> : vector<128x128xf32>
    %58 = tpu.matmul %55, %57, %cst_31 {dimension_numbers = #tpu.dot_dimension_numbers<[1], [0], [0], [1], [0, 0, 1, 1], [], []>} : vector<128x4xbf16>, vector<4x128xbf16>, vector<128x128xf32> -> vector<128x128xf32>
    %59 = arith.addf %49, %58 : vector<128x128xf32>
    %60 = vector.extract_strided_slice %53 {offsets = [0, 1, 0], sizes = [8, 16, 4], strides = [1, 1, 1]} : vector<8x18x4xbf16> to vector<8x16x4xbf16>
    %61 = vector.shape_cast %60 : vector<8x16x4xbf16> to vector<128x4xbf16>
    %c7 = arith.constant 7 : index
    %c0_32 = arith.constant 0 : index
    %c0_33 = arith.constant 0 : index
    %62 = vector.load %arg3[%c7, %c0_32, %c0_33] : memref<9x4x128xbf16, #tpu.memory_space<vmem>>, vector<1x4x128xbf16>
    %63 = vector.shape_cast %62 : vector<1x4x128xbf16> to vector<4x128xbf16>
    %cst_34 = arith.constant dense<0.000000e+00> : vector<128x128xf32>
    %64 = tpu.matmul %61, %63, %cst_34 {dimension_numbers = #tpu.dot_dimension_numbers<[1], [0], [0], [1], [0, 0, 1, 1], [], []>} : vector<128x4xbf16>, vector<4x128xbf16>, vector<128x128xf32> -> vector<128x128xf32>
    %65 = arith.addf %59, %64 : vector<128x128xf32>
    %66 = vector.extract_strided_slice %53 {offsets = [0, 2, 0], sizes = [8, 16, 4], strides = [1, 1, 1]} : vector<8x18x4xbf16> to vector<8x16x4xbf16>
    %67 = vector.shape_cast %66 : vector<8x16x4xbf16> to vector<128x4xbf16>
    %c8 = arith.constant 8 : index
    %c0_35 = arith.constant 0 : index
    %c0_36 = arith.constant 0 : index
    %68 = vector.load %arg3[%c8, %c0_35, %c0_36] : memref<9x4x128xbf16, #tpu.memory_space<vmem>>, vector<1x4x128xbf16>
    %69 = vector.shape_cast %68 : vector<1x4x128xbf16> to vector<4x128xbf16>
    %cst_37 = arith.constant dense<0.000000e+00> : vector<128x128xf32>
    %70 = tpu.matmul %67, %69, %cst_37 {dimension_numbers = #tpu.dot_dimension_numbers<[1], [0], [0], [1], [0, 0, 1, 1], [], []>} : vector<128x4xbf16>, vector<4x128xbf16>, vector<128x128xf32> -> vector<128x128xf32>
    %71 = arith.addf %65, %70 : vector<128x128xf32>
    %c0_38 = arith.constant 0 : index
    %c0_39 = arith.constant 0 : index
    %72 = vector.load %arg4[%c0_38, %c0_39] : memref<1x128xf32, #tpu.memory_space<vmem>>, vector<1x128xf32>
    %73 = vector.broadcast %72 : vector<1x128xf32> to vector<128x128xf32>
    %74 = arith.mulf %71, %73 : vector<128x128xf32>
    %c0_40 = arith.constant 0 : index
    %c0_41 = arith.constant 0 : index
    %75 = vector.load %arg5[%c0_40, %c0_41] : memref<1x128xf32, #tpu.memory_space<vmem>>, vector<1x128xf32>
    %76 = vector.broadcast %75 : vector<1x128xf32> to vector<128x128xf32>
    %77 = arith.addf %74, %76 : vector<128x128xf32>
    %cst_42 = arith.constant 0.000000e+00 : f32
    %78 = vector.broadcast %cst_42 : f32 to vector<128x128xf32>
    %79 = arith.maximumf %77, %78 : vector<128x128xf32>
    %c0_43 = arith.constant 0 : index
    %c0_44 = arith.constant 0 : index
    %80 = vector.load %arg9[%c0_43, %c0_44] : memref<1x128xf32, #tpu.memory_space<vmem>>, vector<1x128xf32>
    %cst_45 = arith.constant dense<0.000000e+00> : vector<128xf32>
    %81 = vector.multi_reduction <add>, %79, %cst_45 [0] : vector<128x128xf32> to vector<128xf32>
    %82 = vector.shape_cast %81 : vector<128xf32> to vector<1x128xf32>
    %83 = arith.addf %80, %82 : vector<1x128xf32>
    %c0_46 = arith.constant 0 : index
    %c0_47 = arith.constant 0 : index
    %84 = vector.load %arg9[%c0_46, %c0_47] : memref<1x128xf32, #tpu.memory_space<vmem>>, vector<1x128xf32>
    tpu.vector_store %arg9[%c0_46, %c0_47], %83 {strides = array<i32>} : memref<1x128xf32, #tpu.memory_space<vmem>>, vector<1x128xf32>,
    %c1_i32_48 = arith.constant 1 : i32
    %85 = arith.cmpi eq, %arg1, %c1_i32_48 : i32
    %86 = arith.extui %85 : i1 to i32
    %c0_i32_49 = arith.constant 0 : i32
    %87 = arith.cmpi ne, %86, %c0_i32_49 : i32
    scf.if %87 {
      %c0_50 = arith.constant 0 : index
      %c0_51 = arith.constant 0 : index
      %88 = vector.load %arg9[%c0_50, %c0_51] : memref<1x128xf32, #tpu.memory_space<vmem>>, vector<1x128xf32>
      %cst_52 = arith.constant 3.906250e-03 : f32
      %89 = vector.broadcast %cst_52 : f32 to vector<1x128xf32>
      %90 = arith.mulf %88, %89 : vector<1x128xf32>
      %c0_53 = arith.constant 0 : index
      %c0_54 = arith.constant 0 : index
      %91 = vector.load %arg6[%c0_53, %c0_54] : memref<128x128xf32, #tpu.memory_space<vmem>>, vector<128x128xf32>
      %cst_55 = arith.constant dense<0.000000e+00> : vector<1x128xf32>
      %92 = tpu.matmul %90, %91, %cst_55 {dimension_numbers = #tpu.dot_dimension_numbers<[1], [0], [0], [1], [0, 0, 1, 1], [], []>} : vector<1x128xf32>, vector<128x128xf32>, vector<1x128xf32> -> vector<1x128xf32>
      %c0_56 = arith.constant 0 : index
      %c0_57 = arith.constant 0 : index
      %93 = vector.load %arg7[%c0_56, %c0_57] : memref<1x128xf32, #tpu.memory_space<vmem>>, vector<1x128xf32>
      %94 = arith.addf %92, %93 : vector<1x128xf32>
      %c0_58 = arith.constant 0 : index
      %c0_59 = arith.constant 0 : index
      %c0_60 = arith.constant 0 : index
      %95 = vector.load %arg8[%c0_58, %c0_59, %c0_60] : memref<1x1x128xf32, #tpu.memory_space<vmem>>, vector<1x1x128xf32>
      %96 = vector.shape_cast %95 : vector<1x1x128xf32> to vector<1x128xf32>
      %97 = vector.shape_cast %94 : vector<1x128xf32> to vector<1x1x128xf32>
      tpu.vector_store %arg8[%c0_58, %c0_59, %c0_60], %97 {strides = array<i32>} : memref<1x1x128xf32, #tpu.memory_space<vmem>>, vector<1x1x128xf32>,
    } else {
    }
    return
  }
  func.func @transform_0(%arg0: i32, %arg1: i32) -> (i32, i32, i32, i32) {
    %c0_i32 = arith.constant 0 : i32
    %c0_i32_0 = arith.constant 0 : i32
    %c0_i32_1 = arith.constant 0 : i32
    %c0_i32_2 = arith.constant 0 : i32
    return %arg0, %c0_i32, %c0_i32_0, %c0_i32_1 : i32, i32, i32, i32
  }
  func.func @transform_1(%arg0: i32, %arg1: i32) -> (i32, i32, i32) {
    %c0_i32 = arith.constant 0 : i32
    %c0_i32_0 = arith.constant 0 : i32
    %c0_i32_1 = arith.constant 0 : i32
    %c0_i32_2 = arith.constant 0 : i32
    return %c0_i32, %c0_i32_0, %c0_i32_1 : i32, i32, i32
  }
  func.func @transform_2(%arg0: i32, %arg1: i32) -> (i32, i32) {
    %c0_i32 = arith.constant 0 : i32
    %c0_i32_0 = arith.constant 0 : i32
    %c0_i32_1 = arith.constant 0 : i32
    return %c0_i32, %c0_i32_0 : i32, i32
  }
  func.func @transform_3(%arg0: i32, %arg1: i32) -> (i32, i32) {
    %c0_i32 = arith.constant 0 : i32
    %c0_i32_0 = arith.constant 0 : i32
    %c0_i32_1 = arith.constant 0 : i32
    return %c0_i32, %c0_i32_0 : i32, i32
  }
  func.func @transform_4(%arg0: i32, %arg1: i32) -> (i32, i32) {
    %c0_i32 = arith.constant 0 : i32
    %c0_i32_0 = arith.constant 0 : i32
    %c0_i32_1 = arith.constant 0 : i32
    return %c0_i32, %c0_i32_0 : i32, i32
  }
  func.func @transform_5(%arg0: i32, %arg1: i32) -> (i32, i32) {
    %c0_i32 = arith.constant 0 : i32
    %c0_i32_0 = arith.constant 0 : i32
    %c0_i32_1 = arith.constant 0 : i32
    return %c0_i32, %c0_i32_0 : i32, i32
  }
  func.func @transform_6(%arg0: i32, %arg1: i32) -> (i32, i32, i32) {
    %c0_i32 = arith.constant 0 : i32
    %c0_i32_0 = arith.constant 0 : i32
    %c0_i32_1 = arith.constant 0 : i32
    return %arg0, %c0_i32, %c0_i32_0 : i32, i32, i32
  }
}

</mosaic_0001>

<bundles_post_ra>
// kernel: tpu_custom_call.1
= control target key start
LH: loop header
LB: loop body
LE: loop exit
PB: predicated region body
PF: predicated region fallthrough
CT: control target
= control target key end

     0   :  { %11 = vsyncpa [#allocation4], 0  ;;  %s5037_s0 = inlined_call_operand.vmem [shape: bf16[2,18,18,4], index: 0, kind: input, shape index: {}]   ;;  %s5038_s1 = inlined_call_operand.vmem [shape: bf16[9,4,128], index: 1, kind: input, shape index: {}]   ;;  %s5039_s2 = inlined_call_operand.vmem [shape: f32[1,128], index: 2, kind: input, shape index: {}]   ;;  %s5040_s3 = inlined_call_operand.vmem [shape: f32[1,128], index: 3, kind: input, shape index: {}]   ;;  %s5041_s4 = inlined_call_operand.vmem [shape: f32[128,128], index: 4, kind: input, shape index: {}]   ;;  %s5042_s5 = inlined_call_operand.vmem [shape: f32[1,128], index: 5, kind: input, shape index: {}]   ;;  %s5043_s6 = inlined_call_operand.hbm [shape: f32[2,1,128], index: 6, kind: output, shape index: {}]  }
   0x1   :  { %13 = vsyncpa [#allocation4 + $0x1], 0  ;;  %s3854_s21 = smov 0   ;;  %s3856_s22 = smov 0  }
   0x2   :  { %s3858_s23 = smov 0   ;;  %s3860_s24 = smov 0  }
   0x3   :  { %s3862_s25 = smov 0   ;;  %s3864_s26 = smov 0  }
   0x4   :  { %s3866_s27 = smov 0   ;;  %s3868_s28 = smov 0  }
   0x5 LB: > { %s2905_s29 = sadd.s32 4294967295, %s3812_s28   ;;  %s2906_s30 = sadd.s32 4294967294, %s3812_s28   ;;  %s3812_s28 = sphi %s3868_s28, %s19_s28   ;;  %s3808_s27 = sphi %s3866_s27, %s5122_s27   ;;  %s3804_s26 = sphi %s3864_s26, %s5121_s26   ;;  %s3800_s25 = sphi %s3862_s25, %s5120_s25   ;;  %s3796_s24 = sphi %s3860_s24, %s5119_s24   ;;  %s3792_s23 = sphi %s3858_s23, %s5118_s23   ;;  %s3788_s22 = sphi %s3856_s22, %s5117_s22   ;;  %s3784_s21 = sphi %s3854_s21, %s5116_s21  }
   0x6   : > { %s28_s7 = sadd.s32 1, %s3804_s26  ;;  %s31_s8 = sadd.s32 1, %s3808_s27 }
   0x7   : > { %p29_p0 = scmp.ge.s32.totalorder %s28_s7, 2  ;;  %p179_p1 = scmp.ne.s32.totalorder %s3792_s23, %s3788_s22 }
   0x8   : > { %p180_p2 = scmp.eq.s32.totalorder %s2905_s29, 3  ;;  %p185_p4 = scmp.ne.s32.totalorder %s3788_s22, %s3784_s21 }
   0x9   : > { %s5124_s7 = smov (%p29_p0, %s28_s7), 0  ;;  %s5126_s8 = smov (!%p29_p0, %s31_s8), %s3808_s27 }
   0xa   : > { %p3903_p3 = por %p180_p2, %p179_p1  ;;  %p33_p5 = scmp.ge.s32.totalorder %s5126_s8, 2 }
   0xb   : > { %p186_p6 = scmp.eq.s32.totalorder %s2906_s30, 3  ;;  %p2909_p7 = scmp.ge.s32.totalorder %s3812_s28, 1 }
   0xc   : > { %p227_p8 = scmp.lt.s32.totalorder %s3812_s28, 5  ;;  %s5128_s8 = smov (%p33_p5, %s5126_s8), 0 }
   0xd   : > { %p3913_p9 = por %p186_p6, %p185_p4  ;;  %s166_s11 = ssub.s32 %s3808_s27, %s5128_s8 }
   0xe   : > { %p228_p10 = pnand %p2909_p7, %p227_p8  ;;  %s169_s12 = sadd.s32 1, %s3792_s23 }
   0xf   : > { %p167_p11 = scmp.eq.s32.totalorder %s166_s11, 0 }
  0x10   : > { %231 = sbr.rel (%p228_p10) target bundleno = 705 (0x2c1), region = 44 }
  0x11   : > { %s3921_s13 = scalar_select %p167_p11, %s3792_s23, %s169_s12  }
  0x17   : > { %s254_s14 = sand.u32 1, %s3788_s22   ;;  %p256_p12 = scmp.lt.s32.totalorder %s3800_s25, 1 }
  0x18   : > { %s3931_s20 = scalar_lea.vmem [#allocation3], %s254_s14  ;;  %p2911_p13 = scmp.ne.s32.totalorder %s3796_s24, 0 }
  0x19   : > { %s257_s15 = scalar_select %p256_p12, %s3800_s25, 1 }
  0x1a   : > { %265 = sbr.rel (%p2911_p13) target bundleno = 33 (0x21), region = 48  ;;  %v3814_v0 = vmov (!%p2911_p13), 0.0  }
  0x1b   : > { %s3609_s16 = smul.u32 216, %s257_s15  ;;  %266 = vst [vmem:[#allocation2] sm:$0x1] (!%p2911_p13), %v3814_v0 }
  0x1d   : > { %s260_s19 = scalar_lea.vmem %s5037_s0, %s3609_s16 }
  0x21 PF: > { %v2915_v1 = vld [vmem:[%s5038_s1 + $0x2] sm:$0x3]  ;;  %vm542_vm0 = vcmask 1041408   ;;  %v3016_v2 = vld [vmem:[%s5038_s1 + $0x8] sm:$0x3]  ;;  %s3149_s15 = smul.u32 96, %s3796_s24 }
  0x22   : > { %3599 = vmatprep.subr.msk.bf16.mxu1 %vm542_vm0, %v2915_v1  ;;  %3603 = vmatprep.subr.msk.bf16.mxu0 %vm542_vm0, %v3016_v2  ;;  %v544_v3 = vsel %vm542_vm0, %v2915_v1, 0  ;;  %v3945_v4 = vsel %vm542_vm0, %v3016_v2, 0  ;;  %vm296_vm1 = vsmask.f32 3328  ;;  %vm297_vm2 = vsmask.f32 7440 }
  0x23   : > { %3249 = vmatpush3.bf16.msra.mxu1 %v544_v3  ;;  %3321 = vmatpush3.bf16.msra.mxu0 %v3945_v4  ;;  %s3948_s16 = scalar_lea.vmem %s260_s19, %s3149_s15  ;;  %v3953_v5 = vld [vmem:[%s5038_s1] sm:$0x3]  ;;  %v3958_v6 = vld [vmem:[%s5038_s1 + $0xa] sm:$0x3]  ;;  %vm4000_vm3 = vmor %vm296_vm1, %vm297_vm2  ;;  %vm517_vm4 = vcmask 31744   ;;  %vm815_vm5 = vcmask 1042432  }
  0x24   : > { %v3961_v7 = vld [vmem:[%s3948_s16] sm:$0xf]  ;;  %v3964_v8 = vld [vmem:[%s3948_s16 + $0x4] sm:$0xf]  ;;  %v3967_v9 = vld [vmem:[%s3948_s16 + $0x8] sm:$0x1]  ;;  %3600 = vmatprep.subr.msk.bf16.mxu1 %vm542_vm0, %v3953_v5  ;;  %3605 = vmatprep.subr.msk.bf16.mxu0 %vm542_vm0, %v3958_v6 }
  0x25   : > { %v300_v10 = vshrl.u32 %v3961_v7, 16  ;;  %v303_v11 = vshll.u32 %v3961_v7, 16  ;;  %v309_v12 = vshll.u32 %v3964_v8, 16  ;;  %v313_v13 = vshrl.u32 %v3964_v8, 16  ;;  %v3978_v14 = vld [vmem:[%s3948_s16 + $0xc] sm:$0xf] }
  0x26   : > { %v319_v15 = vshll.u32 %v3967_v9, 16  ;;  %v3982_v16 = vld [vmem:[%s3948_s16 + $0x10] sm:$0xf]  ;;  %v3985_v17 = vld [vmem:[%s3948_s16 + $0x14] sm:$0x1]  ;;  %v1251_v23 = vshrl.u32 %v3978_v14, 16 }
  0x27   : > { %v302_v18 = vrot.slane %v300_v10, 4  ;;  %v305_v19 = vrot.slane %v303_v11, 5  ;;  %v311_v20 = vrot.slane %v309_v12, 5  ;;  %v315_v21 = vrot.slane %v313_v13, 4  ;;  %v3993_v30 = vld [vmem:[%s3948_s16 + $0xc] sm:$0xf] }
  0x28   : > { %v321_v22 = vrot.slane %v319_v15, 5  ;;  %v1254_v24 = vshll.u32 %v3978_v14, 16  ;;  %v1260_v25 = vshll.u32 %v3982_v16, 16  ;;  %v1264_v28 = vshrl.u32 %v3982_v16, 16  ;;  %v3996_v31 = vld [vmem:[%s3948_s16 + $0x10] sm:$0xf] }
  0x29   : > { %v306_v26 = vor.u32 %v305_v19, %v302_v18  ;;  %v316_v27 = vor.u32 %v315_v21, %v311_v20  ;;  %v1270_v29 = vshll.u32 %v3985_v17, 16  ;;  %v1253_v33 = vrot.slane %v1251_v23, 4  ;;  %v4005_v41 = vld [vmem:[%s3948_s16 + $0x14] sm:$0x1]  ;;  %v4017_v57 = vld [vmem:[%s3948_s16 + $0x18] sm:$0xf] }
  0x2a   : > { %v1256_v34 = vrot.slane %v1254_v24, 5  ;;  %v1262_v35 = vrot.slane %v1260_v25, 5  ;;  %v1266_v38 = vrot.slane %v1264_v28, 4  ;;  %v324_v42 = vshrl.u32 %v3993_v30, 16  ;;  %v4024_v61 = vld [vmem:[%s3948_s16 + $0x1c] sm:$0xf] }
  0x2b   : > { %v307_v36 = vrot.slane %v306_v26, 4  ;;  %v317_v37 = vrot.slane %v316_v27, 4  ;;  %v1272_v39 = vrot.slane %v1270_v29, 5  ;;  %v327_v43 = vshll.u32 %v3993_v30, 16  ;;  %v4027_v62 = vld [vmem:[%s3948_s16 + $0x20] sm:$0x1] }
  0x2c   : > { %v1257_v40 = vor.u32 %v1256_v34, %v1253_v33  ;;  %v333_v44 = vshll.u32 %v3996_v31, 16  ;;  %v1267_v47 = vor.u32 %v1266_v38, %v1262_v35  ;;  %v337_v48 = vshrl.u32 %v3996_v31, 16  ;;  %v4036_v13 = vld [vmem:[%s3948_s16 + $0x18] sm:$0xf]  ;;  %v4042_v21 = vld [vmem:[%s3948_s16 + $0x1c] sm:$0xf] }
  0x2d   : > { %v312_v45 = vsel %vm4000_vm3, %v307_v36, %v311_v20  ;;  %v322_v46 = vsel %vm4000_vm3, %v317_v37, %v321_v22  ;;  %v326_v51 = vrot.slane %v324_v42, 4  ;;  %v329_v52 = vrot.slane %v327_v43, 5  ;;  %v4049_v25 = vld [vmem:[%s3948_s16 + $0x20] sm:$0x1]  ;;  %v4054_v33 = vld [vmem:[%s3948_s16 + $0x24] sm:$0xf] }
  0x2e   : > { %v2916_v49 = vcombine.low %v312_v45, %v322_v46  ;;  %v1258_v50 = vrot.slane %v1257_v40, 4  ;;  %v1268_v53 = vrot.slane %v1267_v47, 4  ;;  %v335_v54 = vrot.slane %v333_v44, 5  ;;  %v4066_v46 = vld [vmem:[%s3948_s16 + $0x28] sm:$0xf]  ;;  %p3145_p0 = scmp.ne.s32.totalorder %s3796_s24, 1 }
  0x2f   : > { %v339_v55 = vrot.slane %v337_v48, 4  ;;  %v343_v56 = vshll.u32 %v4005_v41, 16  ;;  %v1621_v59 = vrot.slane %v3985_v17, 5  ;;  %v330_v60 = vor.u32 %v329_v52, %v326_v51  ;;  %v4070_v51 = vld [vmem:[%s3948_s16 + $0x2c] sm:$0x1] }
  0x30   : > { %3250 = vmatprep.mubr.msk.bf16.mxu1 %vm517_vm4, %v2916_v49  ;;  %v1263_v58 = vsel %vm4000_vm3, %v1258_v50, %v1262_v35  ;;  %v1273_v63 = vsel %vm4000_vm3, %v1268_v53, %v1272_v39  ;;  %v708_v2 = vsel %vm542_vm0, %v3953_v5, 0  ;;  %v1275_v11 = vshrl.u32 %v4017_v57, 16  ;;  %v4891_v32 = vld [vmem:[%s5039_s2] ss:$0 sm:$0xff] }
  0x31   : > { %v340_v0 = vor.u32 %v339_v55, %v335_v54  ;;  %v345_v1 = vrot.slane %v343_v56, 5  ;;  %v3017_v3 = vcombine.low %v1263_v58, %v1273_v63  ;;  %v331_v10 = vrot.slane %v330_v60, 4  ;;  %v4075_v56 = vld [vmem:[%s3948_s16 + $0x24] sm:$0xf] }
  0x32   : > { %v1278_v12 = vshll.u32 %v4017_v57, 16  ;;  %v1284_v18 = vshll.u32 %v4024_v61, 16  ;;  %v1288_v19 = vshrl.u32 %v4024_v61, 16  ;;  %v1294_v20 = vshll.u32 %v4027_v62, 16 }
  0x33   : > { %v341_v15 = vrot.slane %v340_v0, 4  ;;  %3322 = vmatprep.mubr.msk.bf16.mxu0 %vm517_vm4, %v3017_v3  ;;  %v336_v5 = vsel %vm4000_vm3, %v331_v10, %v335_v54  ;;  %v1277_v22 = vrot.slane %v1275_v11, 4  ;;  %v1625_v24 = vrot.slane %v4024_v61, 5  ;;  %v4084_v11 = vld [vmem:[%s3948_s16 + $0x28] sm:$0xf] }
  0x34   : > { %v1280_v23 = vrot.slane %v1278_v12, 5  ;;  %v1286_v27 = vrot.slane %v1284_v18, 5  ;;  %v1290_v28 = vrot.slane %v1288_v19, 4  ;;  %v1296_v29 = vrot.slane %v1294_v20, 5  ;;  %v4090_v20 = vld [vmem:[%s5038_s1 + $0xc] sm:$0x3] }
  0x35   : > { %v346_v26 = vsel %vm4000_vm3, %v341_v15, %v345_v1  ;;  %v1628_v36 = vrot.slane %v4027_v62, 5  ;;  %v1723_v37 = vsel %vm542_vm0, %v3958_v6, 0  ;;  %v348_v39 = vshrl.u32 %v4036_v13, 16 }
  0x36   : > { %v2917_v34 = vcombine.low %v336_v5, %v346_v26  ;;  %v1281_v35 = vor.u32 %v1280_v23, %v1277_v22  ;;  %v1291_v38 = vor.u32 %v1290_v28, %v1286_v27  ;;  %v351_v40 = vshll.u32 %v4036_v13, 16  ;;  %v4094_v26 = vld [vmem:[%s3948_s16 + $0x2c] sm:$0x1] }
  0x37   : > { %v357_v42 = vshll.u32 %v4042_v21, 16  ;;  %v361_v44 = vshrl.u32 %v4042_v21, 16  ;;  %v367_v45 = vshll.u32 %v4049_v25, 16  ;;  %v1299_v6 = vshrl.u32 %v4054_v33, 16 }
  0x38   : > { %3251 = vmatmul.mubr.msk.bf16.vlgmr.msra.gmra.mrb[0].mxu1 %vm517_vm4, %v2917_v34  ;;  %v1282_v43 = vrot.slane %v1281_v35, 4  ;;  %v1292_v47 = vrot.slane %v1291_v38, 4  ;;  %v350_v48 = vrot.slane %v348_v39, 4  ;;  %v353_v49 = vrot.slane %v351_v40, 5  ;;  %v4101_v38 = vld [vmem:[%s3948_s16 + $0x30] sm:$0xf] }
  0x39   : > { %3267 = vmatpush3.bf16.msra.mxu1 %v708_v2  ;;  %v359_v50 = vrot.slane %v357_v42, 5  ;;  %v363_v53 = vrot.slane %v361_v44, 4  ;;  %v369_v54 = vrot.slane %v367_v45, 5  ;;  %v1301_v55 = vrot.slane %v1299_v6, 4  ;;  %v4106_v39 = vld [vmem:[%s5038_s1 + $0x4] sm:$0x3] }
  0x3a   : > { %v1287_v52 = vsel %vm4000_vm3, %v1282_v43, %v1286_v27  ;;  %v1297_v58 = vsel %vm4000_vm3, %v1292_v47, %v1296_v29  ;;  %v354_v60 = vor.u32 %v353_v49, %v350_v48  ;;  %v1302_v63 = vshll.u32 %v4054_v33, 16  ;;  %v4112_v44 = vld [vmem:[%s3948_s16 + $0x34] sm:$0xf]  ;;  %3601 = vmatprep.subr.msk.bf16.mxu1 %vm542_vm0, %v4106_v39 }
  0x3b   : > { %v1308_v0 = vshll.u32 %v4066_v46, 16  ;;  %v3018_v1 = vcombine.low %v1287_v52, %v1297_v58  ;;  %v364_v2 = vor.u32 %v363_v53, %v359_v50  ;;  %v1312_v3 = vshrl.u32 %v4066_v46, 16  ;;  %v4120_v53 = vld [vmem:[%s3948_s16 + $0x38] sm:$0x1] }
  0x3c   : > { %v1318_v10 = vshll.u32 %v4070_v51, 16  ;;  %v355_v12 = vrot.slane %v354_v60, 4  ;;  %v1304_v15 = vrot.slane %v1302_v63, 5  ;;  %v372_v19 = vshrl.u32 %v4075_v56, 16 }
  0x3d   : > { %v1310_v18 = vrot.slane %v1308_v0, 5  ;;  %3323 = vmatmul.mubr.msk.bf16.vlgmr.msra.gmra.mrb[0].mxu0 %vm517_vm4, %v3018_v1  ;;  %v365_v5 = vrot.slane %v364_v2, 4  ;;  %v1314_v22 = vrot.slane %v1312_v3, 4  ;;  %v375_v27 = vshll.u32 %v4075_v56, 16  ;;  %v4129_v0 = vld [vmem:[%s3948_s16 + $0x30] sm:$0xf] }
  0x3e   : > { %v1320_v23 = vrot.slane %v1318_v10, 5  ;;  %3339 = vmatpush3.bf16.msra.mxu0 %v1723_v37  ;;  %v360_v28 = vsel %vm4000_vm3, %v355_v12, %v359_v50  ;;  %v1305_v29 = vor.u32 %v1304_v15, %v1301_v55  ;;  %v374_v34 = vrot.slane %v372_v19, 4  ;;  %v4134_v12 = vld [vmem:[%s3948_s16 + $0x34] sm:$0xf] }
  0x3f   : > { %v381_v35 = vshll.u32 %v4084_v11, 16  ;;  %v370_v40 = vsel %vm4000_vm3, %v365_v5, %v369_v54  ;;  %v1315_v42 = vor.u32 %v1314_v22, %v1310_v18  ;;  %v377_v37 = vrot.slane %v375_v27, 5  ;;  %3606 = vmatprep.subr.msk.bf16.mxu0 %vm542_vm0, %v4090_v20 }
  0x40   : > { %v385_v43 = vshrl.u32 %v4084_v11, 16  ;;  %v2918_v45 = vcombine.low %v360_v28, %v370_v40  ;;  %v1306_v6 = vrot.slane %v1305_v29, 4  ;;  %v391_v48 = vshll.u32 %v4094_v26, 16 }
  0x41   : > { %v383_v47 = vrot.slane %v381_v35, 5  ;;  %v1316_v49 = vrot.slane %v1315_v42, 4  ;;  %v378_v50 = vor.u32 %v377_v37, %v374_v34  ;;  %v1323_v54 = vshrl.u32 %v4101_v38, 16  ;;  %v4143_v35 = vld [vmem:[%s3948_s16 + $0x38] sm:$0x1] }
  0x42   : > { %v387_v52 = vrot.slane %v385_v43, 4  ;;  %3254 = vmatprep.mubr.msk.bf16.mxu1 %vm517_vm4, %v2918_v45  ;;  %v1311_v55 = vsel %vm4000_vm3, %v1306_v6, %v1310_v18  ;;  %v393_v58 = vrot.slane %v391_v48, 5  ;;  %v1326_v60 = vshll.u32 %v4101_v38, 16 }
  0x43   : > { %v1332_v63 = vshll.u32 %v4112_v44, 16  ;;  %v1321_v1 = vsel %vm4000_vm3, %v1316_v49, %v1320_v23  ;;  %v379_v2 = vrot.slane %v378_v50, 4  ;;  %v1325_v10 = vrot.slane %v1323_v54, 4 }
  0x44   : > { %v388_v3 = vor.u32 %v387_v52, %v383_v47  ;;  %v3019_v15 = vcombine.low %v1311_v55, %v1321_v1  ;;  %v1328_v19 = vrot.slane %v1326_v60, 5  ;;  %v1336_v18 = vshrl.u32 %v4112_v44, 16  ;;  %v4151_v52 = vld [vmem:[%s3948_s16 + $0x3c] sm:$0xf] }
  0x45   : > { %v1334_v5 = vrot.slane %v1332_v63, 5  ;;  %v384_v22 = vsel %vm4000_vm3, %v379_v2, %v383_v47  ;;  %v1342_v28 = vshll.u32 %v4120_v53, 16  ;;  %v396_v23 = vshrl.u32 %v4129_v0, 16  ;;  %v4155_v63 = vld [vmem:[%s3948_s16 + $0x40] sm:$0xf] }
  0x46   : > { %v389_v27 = vrot.slane %v388_v3, 4  ;;  %3326 = vmatprep.mubr.msk.bf16.mxu0 %vm517_vm4, %v3019_v15  ;;  %v1329_v29 = vor.u32 %v1328_v19, %v1325_v10  ;;  %v1338_v34 = vrot.slane %v1336_v18, 4  ;;  %v399_v40 = vshll.u32 %v4129_v0, 16 }
  0x47   : > { %v405_v42 = vshll.u32 %v4134_v12, 16  ;;  %v1344_v43 = vrot.slane %v1342_v28, 5  ;;  %v398_v45 = vrot.slane %v396_v23, 4  ;;  %v409_v6 = vshrl.u32 %v4134_v12, 16 }
  0x48   : > { %v394_v37 = vsel %vm4000_vm3, %v389_v27, %v393_v58  ;;  %v1330_v48 = vrot.slane %v1329_v29, 4  ;;  %v1339_v49 = vor.u32 %v1338_v34, %v1334_v5  ;;  %v401_v50 = vrot.slane %v399_v40, 5 }
  0x49   : > { %v2919_v47 = vcombine.low %v384_v22, %v394_v37  ;;  %v407_v54 = vrot.slane %v405_v42, 5  ;;  %v411_v55 = vrot.slane %v409_v6, 4  ;;  %v415_v60 = vshll.u32 %v4143_v35, 16 }
  0x4a   : > { %vm816_vm6 = vcmask 1046532   ;;  %v1335_v58 = vsel %vm4000_vm3, %v1330_v48, %v1334_v5  ;;  %v1340_v1 = vrot.slane %v1339_v49, 4  ;;  %v402_v2 = vor.u32 %v401_v50, %v398_v45  ;;  %v4171_v5 = vld [vmem:[%s3948_s16 + $0x44] sm:$0x1]  ;;  %v4189_v50 = vld [vmem:[%s3948_s16 + $0x48] sm:$0xf] }
  0x4b   : > { %3255 = vmatmul.mubr.msk.bf16.gmra.mrb[4].mxu1 %vm517_vm4, %v2919_v47  ;;  %vm4161_vm7 = vmor %vm815_vm5, %vm816_vm6  ;;  %v3033_v10 = vrot.slane %v3978_v14, 9  ;;  %v412_v15 = vor.u32 %v411_v55, %v407_v54  ;;  %v417_v19 = vrot.slane %v415_v60, 5  ;;  %v1618_v18 = vrot.slane %v3982_v16, 5 }
  0x4c   : > { %v420_v22 = vshrl.u32 %v4151_v52, 16  ;;  %v1345_v27 = vsel %vm4000_vm3, %v1340_v1, %v1344_v43  ;;  %v403_v28 = vrot.slane %v402_v2, 4  ;;  %v423_v23 = vshll.u32 %v4151_v52, 16  ;;  %v4193_v1 = vld [vmem:[%s3948_s16 + $0x4c] sm:$0xf] }
  0x4d   : > { %v429_v29 = vshll.u32 %v4155_v63, 16  ;;  %v3020_v34 = vcombine.low %v1335_v58, %v1345_v27  ;;  %v413_v40 = vrot.slane %v412_v15, 4  ;;  %v1619_v14 = vsel %vm4161_vm7, %v3033_v10, %v1618_v18 }
  0x4e   : > { %v1620_v16 = vrot.slane %v1618_v18, 4  ;;  %v408_v42 = vsel %vm4000_vm3, %v403_v28, %v407_v54  ;;  %v422_v37 = vrot.slane %v420_v22, 4  ;;  %v425_v43 = vrot.slane %v423_v23, 5 }
  0x4f   : > { %v431_v45 = vrot.slane %v429_v29, 5  ;;  %3327 = vmatmul.mubr.msk.bf16.gmra.mrb[4].mxu0 %vm517_vm4, %v3020_v34  ;;  %v418_v6 = vsel %vm4000_vm3, %v413_v40, %v417_v19  ;;  %v433_v48 = vshrl.u32 %v4155_v63, 16  ;;  %v439_v49 = vshll.u32 %v4171_v5, 16  ;;  %v4206_v19 = vld [vmem:[%s3948_s16 + $0x50] sm:$0x1] }
  0x50   : > { %v1622_v47 = vsel %vm4161_vm7, %v1620_v16, %v1621_v59  ;;  %v2920_v54 = vcombine.low %v408_v42, %v418_v6  ;;  %v426_v60 = vor.u32 %v425_v43, %v422_v37  ;;  %v3034_v58 = vrot.slane %v4017_v57, 9  ;;  %v4219_v40 = vld [vmem:[%s3948_s16 + $0x54] sm:$0xf]  ;;  %v4223_v37 = vld [vmem:[%s3948_s16 + $0x58] sm:$0xf] }
  0x51   : > { %v3042_v55 = vcombine.low %v1619_v14, %v1622_v47  ;;  %v435_v2 = vrot.slane %v433_v48, 4  ;;  %v441_v10 = vrot.slane %v439_v49, 5  ;;  %v1627_v17 = vrot.slane %v1625_v24, 4  ;;  %v4231_v47 = vld [vmem:[%s5038_s1 + $0xe] sm:$0x3] }
  0x52   : > { %v1933_v59 = vsel %vm542_vm0, %v4090_v20, 0  ;;  %3258 = vmatprep.mubr.msk.bf16.mxu1 %vm517_vm4, %v2920_v54  ;;  %v427_v15 = vrot.slane %v426_v60, 4  ;;  %v1626_v57 = vsel %vm4161_vm7, %v3034_v58, %v1625_v24  ;;  %v444_v18 = vshrl.u32 %v4189_v50, 16 }
  0x53   : > { %3340 = vmatprep.mubr.msk.bf16.mxu0 %vm517_vm4, %v3042_v55  ;;  %v447_v22 = vshll.u32 %v4189_v50, 16  ;;  %v436_v27 = vor.u32 %v435_v2, %v431_v45  ;;  %v1629_v20 = vsel %vm4161_vm7, %v1627_v17, %v1628_v36  ;;  %v453_v28 = vshll.u32 %v4193_v1, 16  ;;  %v4237_v55 = vld [vmem:[%s3948_s16 + $0x5c] sm:$0x1] }
  0x54   : > { %v457_v61 = vshrl.u32 %v4193_v1, 16  ;;  %v432_v24 = vsel %vm4000_vm3, %v427_v15, %v431_v45  ;;  %v3043_v23 = vcombine.low %v1626_v57, %v1629_v20  ;;  %v446_v29 = vrot.slane %v444_v18, 4 }
  0x55   : > { %v449_v34 = vrot.slane %v447_v22, 5  ;;  %v437_v14 = vrot.slane %v436_v27, 4  ;;  %v455_v16 = vrot.slane %v453_v28, 5  ;;  %v463_v62 = vshll.u32 %v4206_v19, 16  ;;  %v4254_v27 = vld [vmem:[%s3948_s16 + $0x3c] sm:$0xf] }
  0x56   : > { %v459_v42 = vrot.slane %v457_v61, 4  ;;  %v3035_v43 = vrot.slane %v4054_v33, 9  ;;  %v1632_v6 = vrot.slane %v4066_v46, 5  ;;  %v1635_v45 = vrot.slane %v4070_v51, 5 }
  0x57   : > { %v450_v36 = vor.u32 %v449_v34, %v446_v29  ;;  %v442_v48 = vsel %vm4000_vm3, %v437_v14, %v441_v10  ;;  %3341 = vmatmul.mubr.msk.bf16.vlgmr.msra.gmra.mrb[0].mxu0 %vm517_vm4, %v3043_v23  ;;  %v465_v54 = vrot.slane %v463_v62, 5  ;;  %v468_v33 = vshrl.u32 %v4219_v40, 16  ;;  %v4259_v23 = vld [vmem:[%s3948_s16 + $0x40] sm:$0xf]  ;;  %v4262_v29 = vld [vmem:[%s3948_s16 + $0x44] sm:$0x1] }
  0x58   : > { %v460_v49 = vor.u32 %v459_v42, %v455_v16  ;;  %v2921_v46 = vcombine.low %v432_v24, %v442_v48  ;;  %3357 = vmatpush3.bf16.msra.mxu0 %v1933_v59  ;;  %v1633_v60 = vsel %vm4161_vm7, %v3035_v43, %v1632_v6  ;;  %v1634_v58 = vrot.slane %v1632_v6, 4  ;;  %5068 = vst [vmem:[#allocation6_spill] sm:$0xff] %v4262_v29 }
  0x59   : > { %v451_v51 = vrot.slane %v450_v36, 4  ;;  %v470_v10 = vrot.slane %v468_v33, 4  ;;  %v471_v17 = vshll.u32 %v4219_v40, 16  ;;  %v477_v15 = vshll.u32 %v4223_v37, 16  ;;  %3607 = vmatprep.subr.msk.bf16.mxu0 %vm542_vm0, %v4231_v47 }
  0x5a   : > { %v461_v2 = vrot.slane %v460_v49, 4  ;;  %3259 = vmatmul.mubr.msk.bf16.gmra.mrb[8].mxu1 %vm517_vm4, %v2921_v46  ;;  %v1636_v57 = vsel %vm4161_vm7, %v1634_v58, %v1635_v45  ;;  %v481_v18 = vshrl.u32 %v4223_v37, 16  ;;  %v487_v22 = vshll.u32 %v4237_v55, 16  ;;  %v4281_v58 = vld [vmem:[%s3948_s16 + $0x48] sm:$0xf] }
  0x5b   : > { %v456_v59 = vsel %vm4000_vm3, %v451_v51, %v455_v16  ;;  %v3044_v28 = vcombine.low %v1633_v60, %v1636_v57  ;;  %v473_v61 = vrot.slane %v471_v17, 5  ;;  %v479_v24 = vrot.slane %v477_v15, 5  ;;  %v4293_v57 = vld [vmem:[%s3948_s16 + $0x50] sm:$0x1] }
  0x5c   : > { %v466_v20 = vsel %vm4000_vm3, %v461_v2, %v465_v54  ;;  %v483_v14 = vrot.slane %v481_v18, 4  ;;  %v3036_v16 = vrot.slane %v4101_v38, 9  ;;  %v1639_v62 = vrot.slane %v4112_v44, 5  ;;  %v4284_v2 = vld [vmem:[%s3948_s16 + $0x4c] sm:$0xf] }
  0x5d   : > { %v2922_v34 = vcombine.low %v456_v59, %v466_v20  ;;  %3344 = vmatprep.mubr.msk.bf16.mxu0 %vm517_vm4, %v3044_v28  ;;  %v474_v42 = vor.u32 %v473_v61, %v470_v10  ;;  %v1642_v36 = vrot.slane %v4120_v53, 5  ;;  %v3037_v43 = vrot.slane %v4254_v27, 9  ;;  %v4296_v18 = vld [vmem:[%s3948_s16 + $0x54] sm:$0xf] }
  0x5e   : > { %v484_v6 = vor.u32 %v483_v14, %v479_v24  ;;  %v489_v45 = vrot.slane %v487_v22, 5  ;;  %v1646_v48 = vrot.slane %v4259_v23, 5  ;;  %v1649_v38 = vrot.slane %v4262_v29, 5  ;;  %5069 = vst [vmem:[#allocation7_spill] sm:$0xff] %v4296_v18  ;;  %v4299_v22 = vld [vmem:[%s3948_s16 + $0x58] sm:$0xf] }
  0x5f   : > { %3262 = vmatprep.mubr.msk.bf16.mxu1 %vm517_vm4, %v2922_v34  ;;  %v475_v49 = vrot.slane %v474_v42, 4  ;;  %v1640_v44 = vsel %vm4161_vm7, %v3036_v16, %v1639_v62  ;;  %v1641_v54 = vrot.slane %v1639_v62, 4  ;;  %v2932_v15 = vcombine.low %v3961_v7, %v3964_v8  ;;  %5070 = vst [vmem:[#allocation8_spill] sm:$0xff] %v4299_v22  ;;  %v4305_v34 = vld [vmem:[%s3948_s16 + $0x5c] sm:$0x1] }
  0x60   : > { %v485_v53 = vrot.slane %v484_v6, 4  ;;  %v1647_v33 = vsel %vm4161_vm7, %v3037_v43, %v1646_v48  ;;  %v1648_v46 = vrot.slane %v1646_v48, 4  ;;  %v3038_v61 = vrot.slane %v4281_v58, 9  ;;  %5071 = vst [vmem:[#allocation9_spill] sm:$0xff] %v4305_v34  ;;  %v4313_v62 = vld [vmem:[%s3948_s16 + $0x64] sm:$0xf] }
  0x61   : > { %v480_v51 = vsel %vm4000_vm3, %v475_v49, %v479_v24  ;;  %v1643_v60 = vsel %vm4161_vm7, %v1641_v54, %v1642_v36  ;;  %v1653_v24 = vrot.slane %v4284_v2, 5  ;;  %v1656_v14 = vrot.slane %v4293_v57, 5  ;;  %5072 = vst [vmem:[#allocation10_spill] sm:$0xff] %v4313_v62  ;;  %v4319_v6 = vld [vmem:[%s3948_s16 + $0x60] sm:$0xf] }
  0x62   : > { %v490_v10 = vsel %vm4000_vm3, %v485_v53, %v489_v45  ;;  %v3045_v17 = vcombine.low %v1640_v44, %v1643_v60  ;;  %v1650_v59 = vsel %vm4161_vm7, %v1648_v46, %v1649_v38  ;;  %v3039_v16 = vrot.slane %v4296_v18, 9  ;;  %5073 = vst [vmem:[#allocation11_spill] sm:$0xff] %v4319_v6  ;;  %v4322_v45 = vld [vmem:[%s3948_s16 + $0x68] sm:$0x1]  ;;  %v4588_v29 = vld [vmem:[%s3948_s16 + $0x38] sm:$0x1] }
  0x63   : > { %v2923_v20 = vcombine.low %v480_v51, %v490_v10  ;;  %v3046_v28 = vcombine.low %v1647_v33, %v1650_v59  ;;  %v1660_v42 = vrot.slane %v4299_v22, 5  ;;  %v1654_v36 = vsel %vm4161_vm7, %v3038_v61, %v1653_v24  ;;  %5074 = vst [vmem:[#allocation12_spill] sm:$0xff] %v4322_v45  ;;  %5087 = vst [vmem:[#allocation19_spill] sm:$0xff] %v4588_v29 }
  0x64   : > { %3345 = vmatmul.mubr.msk.bf16.gmra.mrb[4].mxu0 %vm517_vm4, %v3045_v17  ;;  %v1655_v43 = vrot.slane %v1653_v24, 4  ;;  %v1663_v49 = vrot.slane %v4305_v34, 5  ;;  %v2933_v44 = vcombine.low %v3993_v30, %v3996_v31  ;;  %v1667_v53 = vrot.slane %v4313_v62, 5  ;;  %v4355_v24 = vld [vmem:[%s3948_s16 + $0x18] sm:$0xf] }
  0x65   : > { %3263 = vmatmul.mubr.msk.bf16.gmra.mrb[12].mxu1 %vm517_vm4, %v2923_v20  ;;  %3348 = vmatprep.mubr.msk.bf16.mxu0 %vm517_vm4, %v3046_v28  ;;  %v1661_v48 = vsel %vm4161_vm7, %v3039_v16, %v1660_v42  ;;  %v1662_v38 = vrot.slane %v1660_v42, 4  ;;  %v3040_v51 = vrot.slane %v4319_v6, 9  ;;  %v1670_v60 = vrot.slane %v4322_v45, 5  ;;  %v4344_v20 = vld [vmem:[%s5038_s1 + $0x6] sm:$0x3] }
  0x66   : > { %3268 = vmatprep.mubr.msk.bf16.mxu1 %vm517_vm4, %v2932_v15  ;;  %v1657_v54 = vsel %vm4161_vm7, %v1655_v43, %v1656_v14  ;;  %v2934_v10 = vcombine.low %v4036_v13, %v4042_v21  ;;  %v1669_v15 = vrot.slane %v1667_v53, 4  ;;  %v925_v59 = vsel %vm542_vm0, %v4106_v39, 0  ;;  %v4358_v14 = vld [vmem:[%s3948_s16 + $0x1c] sm:$0xf] }
  0x67   : > { %v3047_v33 = vcombine.low %v1654_v36, %v1657_v54  ;;  %v1664_v46 = vsel %vm4161_vm7, %v1662_v38, %v1663_v49  ;;  %v827_v28 = vrot.slane %v3996_v31, 5  ;;  %v1668_v61 = vsel %vm4161_vm7, %v3040_v51, %v1667_v53  ;;  %v4376_v54 = vld [vmem:[%s3948_s16 + $0x28] sm:$0xf]  ;;  %v4392_v51 = vld [vmem:[%s3948_s16 + $0x30] sm:$0xf] }
  0x68   : > { %v3048_v17 = vcombine.low %v1661_v48, %v1664_v46  ;;  %v1671_v39 = vsel %vm4161_vm7, %v1669_v15, %v1670_v60  ;;  %v830_v31 = vrot.slane %v4005_v41, 5  ;;  %v2935_v42 = vcombine.low %v4075_v56, %v4084_v11  ;;  %5075 = vst [vmem:[#allocation13_spill] sm:$0xff] %v4392_v51 }
  0x69   : > { %v3049_v16 = vcombine.low %v1668_v61, %v1671_v39  ;;  %v3085_v36 = vcombine.low %v4355_v24, %v4358_v14  ;;  %v2949_v43 = vrot.slane %v3993_v30, 9  ;;  %v829_v48 = vrot.slane %v827_v28, 4  ;;  %v4516_v39 = vld [vmem:[%s3948_s16 + $0x58] sm:$0xf] }
  0x6a   : > { %v823_v38 = vrot.slane %v3967_v9, 5  ;;  %v2936_v49 = vcombine.low %v4129_v0, %v4134_v12  ;;  %v2049_v41 = vshrl.u32 %v4355_v24, 16  ;;  %v2052_v53 = vshll.u32 %v4355_v24, 16 }
  0x6b   : > { %v4382_v30 = vsel %vm4161_vm7, %v2949_v43, %v827_v28  ;;  %v4386_v9 = vsel %vm4161_vm7, %v829_v48, %v830_v31  ;;  %v2937_v46 = vcombine.low %v4151_v52, %v4155_v63  ;;  %v820_v60 = vrot.slane %v3964_v8, 5  ;;  %v4404_v28 = vld [vmem:[%s3948_s16 + $0x34] sm:$0xf] }
  0x6c   : > { %3349 = vmatmul.mubr.msk.bf16.gmra.mrb[8].mxu0 %vm517_vm4, %v3047_v33  ;;  %v2062_v33 = vshrl.u32 %v4358_v14, 16  ;;  %v834_v61 = vrot.slane %v4042_v21, 5  ;;  %v837_v8 = vrot.slane %v4049_v25, 5  ;;  %v2291_v31 = vsel %vm542_vm0, %v4231_v47, 0 }
  0x6d   : > { %3269 = vmatmul.mubr.msk.bf16.vlgmr.msra.gmra.mrb[0].mxu1 %vm517_vm4, %v2933_v44  ;;  %3352 = vmatprep.mubr.msk.bf16.mxu0 %vm517_vm4, %v3048_v17  ;;  %v4373_v44 = vld [vmem:[%s3948_s16 + $0x24] sm:$0xf]  ;;  %v2950_v17 = vrot.slane %v4036_v13, 9  ;;  %v841_v21 = vrot.slane %v4084_v11, 5  ;;  %v844_v25 = vrot.slane %v4094_v26, 5  ;;  %v2938_v43 = vcombine.low %v4189_v50, %v4193_v1 }
  0x6e   : > { %3285 = vmatpush3.bf16.msra.mxu1 %v925_v59  ;;  %3272 = vmatprep.mubr.msk.bf16.mxu1 %vm517_vm4, %v2934_v10  ;;  %v3086_v15 = vcombine.low %v4373_v44, %v4376_v54  ;;  %v3087_v48 = vcombine.low %v4392_v51, %v4404_v28  ;;  %v822_v47 = vrot.slane %v820_v60, 4  ;;  %v2952_v26 = vrot.slane %v4129_v0, 9 }
  0x6f   : > { %3602 = vmatprep.subr.msk.bf16.mxu1 %vm542_vm0, %v4344_v20  ;;  %v843_v11 = vrot.slane %v841_v21, 4  ;;  %v851_v13 = vrot.slane %v4143_v35, 5  ;;  %v2058_v0 = vshll.u32 %v4358_v14, 16  ;;  %v862_v45 = vrot.slane %v4193_v1, 5 }
  0x70   : > { %v824_v35 = vsel %vm4161_vm7, %v822_v47, %v823_v38  ;;  %v2054_v38 = vrot.slane %v2052_v53, 5  ;;  %v4528_v53 = vld [vmem:[%s3948_s16 + $0x64] sm:$0xf]  ;;  %v865_v62 = vrot.slane %v4206_v19, 5  ;;  %v5083_v1 = vshrl.u32 %v4376_v54, 16 }
  0x71   : > { %v869_v22 = vrot.slane %v4223_v37, 5  ;;  %vm3816_vm8 = vmmov (!%p3145_p0), 0  }
  0x73   : > { %v871_v34 = vrot.slane %v869_v22, 4 }
  0x74   : > { %3353 = vmatmul.mubr.msk.bf16.gmra.mrb[12].mxu0 %vm517_vm4, %v3049_v16  ;;  %v2951_v16 = vrot.slane %v4075_v56, 9 }
  0x75   : > { %3273 = vmatmul.mubr.msk.bf16.gmra.mrb[4].mxu1 %vm517_vm4, %v2935_v42  ;;  %3358 = vmatprep.mubr.msk.bf16.mxu0 %vm517_vm4, %v3085_v36  ;;  %v4416_v42 = vsel %vm4161_vm7, %v2950_v17, %v834_v61  ;;  %v836_v36 = vrot.slane %v834_v61, 4  ;;  %v4513_v61 = vld [vmem:[%s3948_s16 + $0x54] sm:$0xf] }
  0x76   : > { %3276 = vmatprep.mubr.msk.bf16.mxu1 %vm517_vm4, %v2936_v49  ;;  %v2948_v49 = vrot.slane %v3961_v7, 9  ;;  %v4431_v17 = vsel %vm4161_vm7, %v2951_v16, %v841_v21  ;;  %v848_v7 = vrot.slane %v4134_v12, 5  ;;  %v4443_v16 = vsel %vm4161_vm7, %v843_v11, %v844_v25  ;;  %v4450_v12 = vld [vmem:[%s3948_s16 + $0x3c] sm:$0xf]  ;;  %v4461_v25 = vld [vmem:[%s5038_s1 + $0x10] sm:$0x3] }
  0x77   : > { %v4427_v56 = vsel %vm4161_vm7, %v836_v36, %v837_v8  ;;  %v2939_v21 = vcombine.low %v4219_v40, %v4223_v37  ;;  %5076 = vst [vmem:[#allocation14_spill] sm:$0xff] %v4450_v12  ;;  %v855_v8 = vrot.slane %v4155_v63, 5  ;;  %v4491_v63 = vld [vmem:[%s3948_s16 + $0x20] sm:$0x1]  ;;  %v3090_v19 = vcombine.low %v4513_v61, %v4516_v39 }
  0x78   : > { %v4456_v10 = vsel %vm4161_vm7, %v2952_v26, %v848_v7  ;;  %v850_v36 = vrot.slane %v848_v7, 4  ;;  %v821_v11 = vsel %vm4161_vm7, %v2948_v49, %v820_v60  ;;  %v4472_v26 = vld [vmem:[%s3948_s16 + $0x48] sm:$0xf]  ;;  %v2953_v7 = vrot.slane %v4151_v52, 9 }
  0x79   : > { %5078 = vst [vmem:[#allocation16_spill] sm:$0xff] %v4472_v26  ;;  %v2051_v60 = vrot.slane %v2049_v41, 4  ;;  %v858_v49 = vrot.slane %v4171_v5, 5  ;;  %v857_v47 = vrot.slane %v855_v8, 4  ;;  %v2082_v52 = vshll.u32 %v4376_v54, 16 }
  0x7a   : > { %v4501_v41 = vsel %vm4161_vm7, %v2953_v7, %v855_v8  ;;  %v2957_v7 = vcombine.low %v821_v11, %v824_v35  ;;  %v2068_v59 = vshll.u32 %v4491_v63, 16 }
  0x7b   : > { %v4521_v8 = vsel %vm4161_vm7, %v857_v47, %v858_v49  ;;  %v5080_v49 = vshrl.u32 %v4373_v44, 16 }
  0x7c   : > { %3359 = vmatmul.mubr.msk.bf16.vlgmr.msra.gmra.mrb[0].mxu0 %vm517_vm4, %v3086_v15  ;;  %v4465_v15 = vld [vmem:[%s3948_s16 + $0x40] sm:$0xf] }
  0x7d   : > { %3277 = vmatmul.mubr.msk.bf16.gmra.mrb[8].mxu1 %vm517_vm4, %v2937_v46  ;;  %3375 = vmatpush3.bf16.msra.mxu0 %v2291_v31  ;;  %5077 = vst [vmem:[#allocation15_spill] sm:$0xff] %v4465_v15  ;;  %v4479_v46 = vld [vmem:[%s3948_s16 + $0x4c] sm:$0xf]  ;;  %v4483_v31 = vsel %vm4161_vm7, %v850_v36, %v851_v13  ;;  %v3088_v5 = vcombine.low %v4450_v12, %v4465_v15  ;;  %v2954_v36 = vrot.slane %v4189_v50, 9  ;;  %v4525_v13 = vld [vmem:[%s3948_s16 + $0x60] sm:$0xf] }
  0x7e   : > { %3280 = vmatprep.mubr.msk.bf16.mxu1 %vm517_vm4, %v2938_v43  ;;  %3362 = vmatprep.mubr.msk.bf16.mxu0 %vm517_vm4, %v3087_v48  ;;  %5079 = vst [vmem:[#allocation17_spill] sm:$0xff] %v4479_v46  ;;  %v4493_v43 = vrot.slane %v2058_v0, 5  ;;  %v2064_v48 = vrot.slane %v2062_v33, 4  ;;  %v3089_v33 = vcombine.low %v4472_v26, %v4479_v46  ;;  %v2055_v0 = vor.u32 %v2054_v38, %v2051_v60  ;;  %v4544_v60 = vld [vmem:[%s3948_s16 + $0x2c] sm:$0x1] }
  0x7f   : > { %3608 = vmatprep.subr.msk.bf16.mxu0 %vm542_vm0, %v4461_v25  ;;  %v2075_v47 = vrot.slane %v5080_v49, 4  ;;  %v5081_v50 = vshll.u32 %v4373_v44, 16  ;;  %5082 = vst [vmem:[#allocation18_spill] sm:$0xff] %v4544_v60  ;;  %v4546_v38 = vrot.slane %v2082_v52, 5  ;;  %v864_v49 = vrot.slane %v862_v45, 4 }
  0x80   : > { %v2065_v35 = vor.u32 %v2064_v48, %v4493_v43  ;;  %v2088_v48 = vrot.slane %v5083_v1, 4  ;;  %v2106_v52 = vshll.u32 %v4404_v28, 16 }
  0x81   : > { %v2078_v6 = vrot.slane %v5081_v50, 5  ;;  %v2056_v50 = vrot.slane %v2055_v0, 4  ;;  %v4562_v1 = vsel %vm4161_vm7, %v864_v49, %v865_v62  ;;  %v5084_v0 = vshrl.u32 %v4392_v51, 16 }
  0x82   : > { %v2066_v11 = vrot.slane %v2065_v35, 4  ;;  %v5085_v62 = vshll.u32 %v4392_v51, 16  ;;  %v4575_v18 = vrot.slane %v2106_v52, 5 }
  0x83   : > { %v2099_v35 = vrot.slane %v5084_v0, 4  ;;  %v1135_v0 = vsel %vm542_vm0, %v4344_v20, 0 }
  0x84   : > { %3363 = vmatmul.mubr.msk.bf16.gmra.mrb[4].mxu0 %vm517_vm4, %v3088_v5  ;;  %v4552_v5 = vsel %vm4161_vm7, %v2954_v36, %v862_v45  ;;  %v2955_v36 = vrot.slane %v4219_v40, 9  ;;  %v2079_v45 = vor.u32 %v2078_v6, %v2075_v47  ;;  %v2102_v49 = vrot.slane %v5085_v62, 5 }
  0x85   : > { %3281 = vmatmul.mubr.msk.bf16.gmra.mrb[12].mxu1 %vm517_vm4, %v2939_v21  ;;  %3366 = vmatprep.mubr.msk.bf16.mxu0 %vm517_vm4, %v3089_v33  ;;  %v3091_v21 = vcombine.low %v4525_v13, %v4528_v53  ;;  %v2070_v33 = vrot.slane %v2068_v59, 5  ;;  %v2089_v59 = vor.u32 %v2088_v48, %v4546_v38  ;;  %v872_v40 = vrot.slane %v4237_v55, 5 }
  0x86   : > { %3286 = vmatprep.mubr.msk.bf16.mxu1 %vm517_vm4, %v2957_v7  ;;  %v2092_v7 = vshll.u32 %v4544_v60, 16  ;;  %v5086_v6 = vshrl.u32 %v4404_v28, 16  ;;  %v4581_v37 = vsel %vm4161_vm7, %v2955_v36, %v869_v22  ;;  %v2158_v48 = vshrl.u32 %v4479_v46, 16 }
  0x87   : > { %v2130_v55 = vshll.u32 %v4465_v15, 16  ;;  %v2061_v22 = vsel %vm4000_vm3, %v2056_v50, %v4493_v43  ;;  %v2071_v36 = vsel %vm4000_vm3, %v2066_v11, %v2070_v33  ;;  %v4603_v20 = vsel %vm4161_vm7, %v871_v34, %v872_v40 }
  0x88   : > { %v2112_v47 = vrot.slane %v5086_v6, 4  ;;  %v4594_v6 = vld [vmem:[%s3948_s16 + $0x6c] sm:$0xf]  ;;  %v5088_v62 = vcombine.low %v4382_v30, %v4386_v9  ;;  %v2080_v52 = vrot.slane %v2079_v45, 4  ;;  %v2090_v51 = vrot.slane %v2089_v59, 4 }
  0x89   : > { %v2094_v60 = vrot.slane %v2092_v7, 5  ;;  %v5089_v34 = vcombine.low %v4416_v42, %v4427_v56  ;;  %v2103_v30 = vor.u32 %v2102_v49, %v2099_v35  ;;  %v2116_v11 = vshll.u32 %v4588_v29, 16  ;;  %v3709_v35 = vld [vmem:[%s5038_s1 + $0x8] sm:$0x3] }
  0x8a   : > { %v2113_v9 = vor.u32 %v2112_v47, %v4575_v18  ;;  %v5090_v33 = vshrl.u32 %v4450_v12, 16  ;;  %v5091_v45 = vshll.u32 %v4450_v12, 16  ;;  %v4626_v59 = vrot.slane %v2130_v55, 5  ;;  %v4638_v47 = vld [vmem:[%s3948_s16 + $0x44] sm:$0x1] }
  0x8b   : > { %v5092_v42 = vshrl.u32 %v4465_v15, 16  ;;  %v2182_v49 = vshrl.u32 %v4516_v39, 16  ;;  %v5094_v55 = vshll.u32 %v4472_v26, 16  ;;  %v2085_v12 = vsel %vm4000_vm3, %v2080_v52, %v4546_v38 }
  0x8c   : > { %3367 = vmatmul.mubr.msk.bf16.gmra.mrb[8].mxu0 %vm517_vm4, %v3090_v19  ;;  %v4611_v19 = vld [vmem:[%s3948_s16 + $0x70] sm:$0xf]  ;;  %v2123_v50 = vrot.slane %v5090_v33, 4  ;;  %v2126_v7 = vrot.slane %v5091_v45, 5  ;;  %v2193_v33 = vshrl.u32 %v4525_v13, 16  ;;  %v3102_v45 = vcombine.low %v2061_v22, %v2071_v36 }
  0x8d   : > { %3287 = vmatmul.mubr.msk.bf16.vlgmr.msra.gmra.mrb[0].mxu1 %vm517_vm4, %v5088_v62  ;;  %3370 = vmatprep.mubr.msk.bf16.mxu0 %vm517_vm4, %v3091_v21  ;;  %v2154_v21 = vshll.u32 %v4479_v46, 16  ;;  %v2136_v56 = vrot.slane %v5092_v42, 4  ;;  %v3092_v40 = vcombine.low %v4594_v6, %v4611_v19  ;;  %v4646_v42 = vld [vmem:[%s3948_s16 + $0x50] sm:$0x1]  ;;  %v2104_v46 = vrot.slane %v2103_v30, 4 }
  0x8e   : > { %3303 = vmatpush3.bf16.msra.mxu1 %v1135_v0  ;;  %3290 = vmatprep.mubr.msk.bf16.mxu1 %vm517_vm4, %v5089_v34  ;;  %v5093_v0 = vshrl.u32 %v4472_v26, 16  ;;  %v2150_v34 = vrot.slane %v5094_v55, 5  ;;  %v2114_v15 = vrot.slane %v2113_v9, 4  ;;  %v2118_v29 = vrot.slane %v2116_v11, 5 }
  0x8f   : > { %3604 = vmatprep.subr.msk.bf16.mxu1 %vm542_vm0, %v3709_v35  ;;  %v4648_v43 = vrot.slane %v2154_v21, 5  ;;  %v2160_v35 = vrot.slane %v2158_v48, 4  ;;  %v2127_v26 = vor.u32 %v2126_v7, %v2123_v50  ;;  %v2137_v55 = vor.u32 %v2136_v56, %v4626_v59 }
  0x90   : > { %v2147_v62 = vrot.slane %v5093_v0, 4  ;;  %v2095_v0 = vsel %vm4000_vm3, %v2090_v51, %v2094_v60  ;;  %v2140_v22 = vshll.u32 %v4638_v47, 16  ;;  %v2196_v36 = vshll.u32 %v4525_v13, 16 }
  0x91   : > { %v2206_v21 = vshrl.u32 %v4528_v53, 16  ;;  %v2164_v38 = vshll.u32 %v4646_v42, 16  ;;  %v5095_v52 = vcombine.low %v4431_v17, %v4443_v16  ;;  %v2217_v51 = vshrl.u32 %v4594_v6, 16 }
  0x92   : > { %v2151_v48 = vor.u32 %v2150_v34, %v2147_v62  ;;  %v2220_v60 = vshll.u32 %v4594_v6, 16  ;;  %v2161_v30 = vor.u32 %v2160_v35, %v4648_v43  ;;  %v2178_v9 = vshll.u32 %v4516_v39, 16 }
  0x93   : > { %v5096_v11 = vcombine.low %v4456_v10, %v4483_v31  ;;  %v3103_v50 = vcombine.low %v2085_v12, %v2095_v0  ;;  %v2109_v17 = vsel %vm4000_vm3, %v2104_v46, %v4575_v18  ;;  %v2119_v16 = vsel %vm4000_vm3, %v2114_v15, %v2118_v29  ;;  %v4685_v18 = vld [vmem:[%s3948_s16 + $0x5c] sm:$0x1] }
  0x94   : > { %3371 = vmatmul.mubr.msk.bf16.gmra.mrb[12].mxu0 %vm517_vm4, %v3092_v40  ;;  %v2202_v7 = vshll.u32 %v4528_v53, 16  ;;  %v2128_v56 = vrot.slane %v2127_v26, 4  ;;  %v2138_v40 = vrot.slane %v2137_v55, 4  ;;  %v2142_v62 = vrot.slane %v2140_v22, 5  ;;  %v4692_v22 = vld [vmem:[%s3948_s16 + $0x68] sm:$0x1] }
  0x95   : > { %3291 = vmatmul.mubr.msk.bf16.gmra.mrb[4].mxu1 %vm517_vm4, %v5095_v52  ;;  %3376 = vmatprep.mubr.msk.bf16.mxu0 %vm517_vm4, %v3102_v45  ;;  %v5097_v34 = vshrl.u32 %v4513_v61, 16  ;;  %v2152_v10 = vrot.slane %v2151_v48, 4  ;;  %v2166_v31 = vrot.slane %v2164_v38, 5  ;;  %v5098_v12 = vshll.u32 %v4513_v61, 16 }
  0x96   : > { %3294 = vmatprep.mubr.msk.bf16.mxu1 %vm517_vm4, %v5096_v11  ;;  %v2184_v0 = vrot.slane %v2182_v49, 4  ;;  %v2162_v52 = vrot.slane %v2161_v30, 4  ;;  %v4687_v46 = vrot.slane %v2178_v9, 5  ;;  %v2195_v29 = vrot.slane %v2193_v33, 4 }
  0x97   : > { %v2171_v45 = vrot.slane %v5097_v34, 4  ;;  %v2174_v35 = vrot.slane %v5098_v12, 5  ;;  %v2198_v15 = vrot.slane %v2196_v36, 5  ;;  %v2521_v26 = vsel %vm542_vm0, %v4461_v25, 0 }
  0x98   : > { %v3104_v55 = vcombine.low %v2109_v17, %v2119_v16  ;;  %v4694_v11 = vrot.slane %v2202_v7, 5  ;;  %v2208_v48 = vrot.slane %v2206_v21, 4  ;;  %v2230_v38 = vshrl.u32 %v4611_v19, 16 }
  0x99   : > { %v2133_v49 = vsel %vm4000_vm3, %v2128_v56, %v4626_v59  ;;  %v2226_v30 = vshll.u32 %v4611_v19, 16  ;;  %v2143_v33 = vsel %vm4000_vm3, %v2138_v40, %v2142_v62  ;;  %v2157_v25 = vsel %vm4000_vm3, %v2152_v10, %v4648_v43  ;;  %v3710_v10 = vld [vmem:[%s3948_s16 + $0xc] sm:$0xf] }
  0x9a   : > { %v2175_v36 = vor.u32 %v2174_v35, %v2171_v45  ;;  %v2188_v21 = vshll.u32 %v4685_v18, 16  ;;  %v5099_v9 = vcombine.low %v4501_v41, %v4521_v8  ;;  %v2167_v59 = vsel %vm4000_vm3, %v2162_v52, %v2166_v31  ;;  %v3711_v31 = vld [vmem:[%s3948_s16 + $0x10] sm:$0xf]  ;;  %v4732_v35 = vld [vmem:[%s3948_s16 + $0x74] sm:$0x1] }
  0x9b   : > { %v2199_v17 = vor.u32 %v2198_v15, %v2195_v29  ;;  %v2212_v16 = vshll.u32 %v4692_v22, 16  ;;  %v5100_v43 = vcombine.low %v4552_v5, %v4562_v1  ;;  %v2209_v41 = vor.u32 %v2208_v48, %v4694_v11 }
  0x9c   : > { %3377 = vmatmul.mubr.msk.bf16.vlgmr.msra.gmra.mrb[0].mxu0 %vm517_vm4, %v3103_v50  ;;  %v2185_v50 = vor.u32 %v2184_v0, %v4687_v46  ;;  %v2219_v8 = vrot.slane %v2217_v51, 4  ;;  %v2222_v7 = vrot.slane %v2220_v60, 5  ;;  %v3005_v56 = vcombine.low %v4281_v58, %v4284_v2 }
  0x9d   : > { %3295 = vmatmul.mubr.msk.bf16.gmra.mrb[8].mxu1 %vm517_vm4, %v5099_v9  ;;  %3393 = vmatpush3.bf16.msra.mxu0 %v2521_v26  ;;  %v1371_v40 = vshrl.u32 %v4281_v58, 16  ;;  %v4725_v62 = vrot.slane %v2226_v30, 5  ;;  %v2232_v34 = vrot.slane %v2230_v38, 4  ;;  %v1374_v45 = vshll.u32 %v4281_v58, 16 }
  0x9e   : > { %3298 = vmatprep.mubr.msk.bf16.mxu1 %vm517_vm4, %v5100_v43  ;;  %3380 = vmatprep.mubr.msk.bf16.mxu0 %vm517_vm4, %v3104_v55  ;;  %v1380_v5 = vshll.u32 %v4284_v2, 16  ;;  %v3105_v1 = vcombine.low %v2133_v49, %v2143_v33  ;;  %v3000_v12 = vcombine.low %v3710_v10, %v3711_v31  ;;  %v3106_v51 = vcombine.low %v2157_v25, %v2167_v59 }
  0x9f   : > { %v2176_v60 = vrot.slane %v2175_v36, 4  ;;  %v2186_v0 = vrot.slane %v2185_v50, 4  ;;  %v2190_v52 = vrot.slane %v2188_v21, 5  ;;  %v2200_v29 = vrot.slane %v2199_v17, 4 }
  0xa0   : > { %v2210_v15 = vrot.slane %v2209_v41, 4  ;;  %v2214_v26 = vrot.slane %v2212_v16, 5  ;;  %v2223_v55 = vor.u32 %v2222_v7, %v2219_v8  ;;  %v1384_v48 = vshrl.u32 %v4284_v2, 16  ;;  %v3712_v7 = vld [vmem:[%s3948_s16 + $0x18] sm:$0xf] }
  0xa1   : > { %v2233_v38 = vor.u32 %v2232_v34, %v4725_v62  ;;  %v2236_v30 = vshll.u32 %v4732_v35, 16  ;;  %v1373_v49 = vrot.slane %v1371_v40, 4  ;;  %v2416_v33 = vrot.slane %v4358_v14, 5  ;;  %v3713_v40 = vld [vmem:[%s3948_s16 + $0x1c] sm:$0xf] }
  0xa2   : > { %v1376_v9 = vrot.slane %v1374_v45, 5  ;;  %v1382_v25 = vrot.slane %v1380_v5, 5  ;;  %v5101_v36 = vcombine.low %v4581_v37, %v4603_v20  ;;  %v2181_v21 = vsel %vm4000_vm3, %v2176_v60, %v4687_v46 }
  0xa3   : > { %v2191_v59 = vsel %vm4000_vm3, %v2186_v0, %v2190_v52  ;;  %v1390_v14 = vshll.u32 %v4293_v57, 16  ;;  %v2205_v37 = vsel %vm4000_vm3, %v2200_v29, %v4694_v11  ;;  %v2215_v20 = vsel %vm4000_vm3, %v2210_v15, %v2214_v26  ;;  %v3714_v11 = vld [vmem:[%s3948_s16 + $0x24] sm:$0xf] }
  0xa4   : > { %3381 = vmatmul.mubr.msk.bf16.gmra.mrb[4].mxu0 %vm517_vm4, %v3105_v1  ;;  %v2224_v50 = vrot.slane %v2223_v55, 4  ;;  %v1386_v17 = vrot.slane %v1384_v48, 4  ;;  %v2234_v16 = vrot.slane %v2233_v38, 4  ;;  %v2238_v46 = vrot.slane %v2236_v30, 5  ;;  %v3715_v1 = vld [vmem:[%s3948_s16 + $0x28] sm:$0xf] }
  0xa5   : > { %3299 = vmatmul.mubr.msk.bf16.gmra.mrb[12].mxu1 %vm517_vm4, %v5101_v36  ;;  %3384 = vmatprep.mubr.msk.bf16.mxu0 %vm517_vm4, %v3106_v51  ;;  %v3118_v43 = vrot.slane %v4355_v24, 9  ;;  %v3107_v41 = vcombine.low %v2181_v21, %v2191_v59  ;;  %v2418_v8 = vrot.slane %v2416_v33, 4  ;;  %v2419_v57 = vrot.slane %v4491_v63, 5  ;;  %v3716_v48 = vld [vmem:[%s3948_s16 + $0x30] sm:$0xf]  ;;  %v5103_v21 = vld [vmem:[#allocation13_spill] sm:$0xff] }
  0xa6   : > { %3304 = vmatprep.mubr.msk.bf16.mxu1 %vm517_vm4, %v3000_v12  ;;  %v3001_v34 = vcombine.low %v3712_v7, %v3713_v40  ;;  %v3108_v45 = vcombine.low %v2205_v37, %v2215_v20  ;;  %v1392_v5 = vrot.slane %v1390_v14, 5  ;;  %v3002_v10 = vcombine.low %v3714_v11, %v3715_v1  ;;  %v5104_v14 = vld [vmem:[#allocation19_spill] sm:$0xff]  ;;  %v5107_v1 = vld [vmem:[#allocation17_spill] sm:$0xff] }
  0xa7   : > { %v2229_v31 = vsel %vm4000_vm3, %v2224_v50, %v4725_v62  ;;  %v1377_v12 = vor.u32 %v1376_v9, %v1373_v49  ;;  %v2239_v24 = vsel %vm4000_vm3, %v2234_v16, %v2238_v46  ;;  %v2417_v51 = vsel %vm4161_vm7, %v3118_v43, %v2416_v33  ;;  %v5102_v49 = vld [vmem:[#allocation18_spill] sm:$0xff]  ;;  %v5105_v40 = vld [vmem:[#allocation15_spill] sm:$0xff] }
  0xa8   : > { %v2423_v63 = vrot.slane %v4376_v54, 5  ;;  %v1387_v60 = vor.u32 %v1386_v17, %v1382_v25  ;;  %v2420_v0 = vsel %vm4161_vm7, %v2418_v8, %v2419_v57  ;;  %v2430_v52 = vrot.slane %v4404_v28, 5  ;;  %v3717_v28 = vld [vmem:[%s3948_s16 + $0x34] sm:$0xf] }
  0xa9   : > { %v1347_v62 = vshrl.u32 %v4254_v27, 16  ;;  %v1378_v29 = vrot.slane %v1377_v12, 4  ;;  %v1350_v15 = vshll.u32 %v4254_v27, 16  ;;  %v1356_v54 = vshll.u32 %v4259_v23, 16  ;;  %v5108_v12 = vld [vmem:[#allocation14_spill] sm:$0xff] }
  0xaa   : > { %v1360_v26 = vshrl.u32 %v4259_v23, 16  ;;  %v1388_v55 = vrot.slane %v1387_v60, 4  ;;  %v3003_v38 = vcombine.low %v3716_v48, %v3717_v28  ;;  %v3119_v30 = vrot.slane %v4373_v44, 9 }
  0xab   : > { %v2426_v33 = vrot.slane %v5102_v49, 5  ;;  %v1383_v9 = vsel %vm4000_vm3, %v1378_v29, %v1382_v25  ;;  %v2425_v36 = vrot.slane %v2423_v63, 4  ;;  %v3120_v59 = vrot.slane %v5103_v21, 9 }
  0xac   : > { %3385 = vmatmul.mubr.msk.bf16.gmra.mrb[8].mxu0 %vm517_vm4, %v3107_v41  ;;  %v2433_v37 = vrot.slane %v5104_v14, 5  ;;  %v3109_v20 = vcombine.low %v2229_v31, %v2239_v24  ;;  %v3127_v50 = vcombine.low %v2417_v51, %v2420_v0  ;;  %v2432_v17 = vrot.slane %v2430_v52, 4 }
  0xad   : > { %3305 = vmatmul.mubr.msk.bf16.vlgmr.msra.gmra.mrb[0].mxu1 %vm517_vm4, %v3001_v34  ;;  %3388 = vmatprep.mubr.msk.bf16.mxu0 %vm517_vm4, %v3108_v45  ;;  %v1349_v46 = vrot.slane %v1347_v62, 4  ;;  %v1352_v44 = vrot.slane %v1350_v15, 5  ;;  %v1358_v43 = vrot.slane %v1356_v54, 5  ;;  %v1362_v41 = vrot.slane %v1360_v26, 4  ;;  %v5106_v45 = vld [vmem:[#allocation6_spill] sm:$0xff] }
  0xae   : > { %3470 = vmatpush3.bf16.msra.mxu1 %v3945_v4  ;;  %3308 = vmatprep.mubr.msk.bf16.mxu1 %vm517_vm4, %v3002_v10  ;;  %v1393_v4 = vsel %vm4000_vm3, %v1388_v55, %v1392_v5  ;;  %v3004_v25 = vcombine.low %v4254_v27, %v4259_v23  ;;  %v2424_v8 = vsel %vm4161_vm7, %v3119_v30, %v2423_v63  ;;  %v2437_v34 = vrot.slane %v5105_v40, 5  ;;  %v5109_v63 = vld [vmem:[#allocation7_spill] sm:$0xff]  ;;  %v5111_v55 = vld [vmem:[#allocation16_spill] sm:$0xff] }
  0xaf   : > { %v4792_v16 = vcombine.low %v1383_v9, %v1393_v4  ;;  %v2427_v57 = vsel %vm4161_vm7, %v2425_v36, %v2426_v33  ;;  %v2431_v7 = vsel %vm4161_vm7, %v3120_v59, %v2430_v52  ;;  %v1366_v5 = vshll.u32 %v5106_v45, 16  ;;  %v5110_v52 = vld [vmem:[#allocation8_spill] sm:$0xff]  ;;  %v5112_v33 = vld [vmem:[#allocation10_spill] sm:$0xff]  ;;  %v5113_v9 = vld [vmem:[#allocation11_spill] sm:$0xff] }
  0xb0   : > { %v2434_v27 = vsel %vm4161_vm7, %v2432_v17, %v2433_v37  ;;  %v1353_v23 = vor.u32 %v1352_v44, %v1349_v46  ;;  %v1363_v11 = vor.u32 %v1362_v41, %v1358_v43  ;;  %v2444_v10 = vrot.slane %v5107_v1, 5 }
  0xb1   : > { %v3128_v31 = vcombine.low %v2424_v8, %v2427_v57  ;;  %v3121_v24 = vrot.slane %v5108_v12, 9  ;;  %v2440_v51 = vrot.slane %v4638_v47, 5  ;;  %v1395_v60 = vshrl.u32 %v5109_v63, 16  ;;  %v5114_v57 = vld [vmem:[#allocation9_spill] sm:$0xff] }
  0xb2   : > { %v1398_v0 = vshll.u32 %v5109_v63, 16  ;;  %v1404_v62 = vshll.u32 %v5110_v52, 16  ;;  %v1408_v29 = vshrl.u32 %v5110_v52, 16  ;;  %v3129_v15 = vcombine.low %v2431_v7, %v2434_v27 }
  0xb3   : > { %v2439_v54 = vrot.slane %v2437_v34, 4  ;;  %v1368_v26 = vrot.slane %v1366_v5, 5  ;;  %v3122_v48 = vrot.slane %v5111_v55, 9  ;;  %v1354_v28 = vrot.slane %v1353_v23, 4 }
  0xb4   : > { %3389 = vmatmul.mubr.msk.bf16.gmra.mrb[12].mxu0 %vm517_vm4, %v3109_v20  ;;  %v2446_v30 = vrot.slane %v2444_v10, 4  ;;  %v2447_v49 = vrot.slane %v4646_v42, 5  ;;  %v3006_v47 = vcombine.low %v5109_v63, %v5110_v52  ;;  %v3007_v36 = vcombine.low %v5113_v9, %v5112_v33 }
  0xb5   : > { %3309 = vmatmul.mubr.msk.bf16.gmra.mrb[4].mxu1 %vm517_vm4, %v3003_v38  ;;  %3394 = vmatprep.mubr.msk.bf16.mxu0 %vm517_vm4, %v3127_v50  ;;  %v1364_v38 = vrot.slane %v1363_v11, 4  ;;  %v1397_v21 = vrot.slane %v1395_v60, 4  ;;  %v1400_v59 = vrot.slane %v1398_v0, 5  ;;  %v1406_v14 = vrot.slane %v1404_v62, 5  ;;  %v5115_v62 = vld [vmem:[#allocation12_spill] sm:$0xff] }
  0xb6   : > { %3312 = vmatprep.mubr.msk.bf16.mxu1 %vm517_vm4, %v3004_v25  ;;  %v1410_v37 = vrot.slane %v1408_v29, 4  ;;  %v2438_v4 = vsel %vm4161_vm7, %v3121_v24, %v2437_v34  ;;  %v2441_v20 = vsel %vm4161_vm7, %v2439_v54, %v2440_v51  ;;  %v2445_v42 = vsel %vm4161_vm7, %v3122_v48, %v2444_v10 }
  0xb7   : > { %v2451_v50 = vrot.slane %v4516_v39, 5  ;;  %v1359_v17 = vsel %vm4000_vm3, %v1354_v28, %v1358_v43  ;;  %v1369_v46 = vsel %vm4000_vm3, %v1364_v38, %v1368_v26  ;;  %v2448_v44 = vsel %vm4161_vm7, %v2446_v30, %v2447_v49 }
  0xb8   : > { %v2458_v41 = vrot.slane %v4528_v53, 5  ;;  %v1419_v39 = vshrl.u32 %v5113_v9, 16  ;;  %v1422_v58 = vshll.u32 %v5113_v9, 16  ;;  %v1428_v2 = vshll.u32 %v5112_v33, 16 }
  0xb9   : > { %v3130_v25 = vcombine.low %v2438_v4, %v2441_v20  ;;  %v1401_v43 = vor.u32 %v1400_v59, %v1397_v21  ;;  %v1411_v8 = vor.u32 %v1410_v37, %v1406_v14  ;;  %v1414_v7 = vshll.u32 %v5114_v57, 16 }
  0xba   : > { %v3131_v40 = vcombine.low %v2445_v42, %v2448_v44  ;;  %v3123_v34 = vrot.slane %v4513_v61, 9  ;;  %v2453_v45 = vrot.slane %v2451_v50, 4  ;;  %v2454_v53 = vrot.slane %v4685_v18, 5 }
  0xbb   : > { %v3021_v5 = vcombine.low %v1359_v17, %v1369_v46  ;;  %v3124_v27 = vrot.slane %v4525_v13, 9  ;;  %v2460_v23 = vrot.slane %v2458_v41, 4  ;;  %v2461_v11 = vrot.slane %v4692_v22, 5 }
  0xbc   : > { %3395 = vmatmul.mubr.msk.bf16.vlgmr.msra.gmra.mrb[0].mxu0 %vm517_vm4, %v3128_v31  ;;  %v1421_v1 = vrot.slane %v1419_v39, 4  ;;  %v1424_v10 = vrot.slane %v1422_v58, 5  ;;  %v1430_v31 = vrot.slane %v1428_v2, 5  ;;  %v1402_v24 = vrot.slane %v1401_v43, 4  ;;  %v4897_v58 = vld [vmem:[%s5040_s3] ss:$0 sm:$0xff] }
  0xbd   : > { %3313 = vmatmul.mubr.msk.bf16.gmra.mrb[8].mxu1 %vm517_vm4, %v3005_v56  ;;  %3398 = vmatprep.mubr.msk.bf16.mxu0 %vm517_vm4, %v3129_v15  ;;  %v1432_v56 = vshrl.u32 %v5112_v33, 16  ;;  %v1412_v51 = vrot.slane %v1411_v8, 4  ;;  %v1416_v63 = vrot.slane %v1414_v7, 5  ;;  %v2452_v61 = vsel %vm4161_vm7, %v3123_v34, %v2451_v50 }
  0xbe   : > { %3316 = vmatprep.mubr.msk.bf16.mxu1 %vm517_vm4, %v3006_v47  ;;  %v2455_v13 = vsel %vm4161_vm7, %v2453_v45, %v2454_v53  ;;  %v2459_v18 = vsel %vm4161_vm7, %v3124_v27, %v2458_v41  ;;  %v2465_v22 = vrot.slane %v4611_v19, 5  ;;  %v2462_v60 = vsel %vm4161_vm7, %v2460_v23, %v2461_v11 }
  0xbf   : > { %v1434_v12 = vrot.slane %v1432_v56, 4  ;;  %v1425_v0 = vor.u32 %v1424_v10, %v1421_v1  ;;  %v1438_v29 = vshll.u32 %v5115_v62, 16  ;;  %v1407_v15 = vsel %vm4000_vm3, %v1402_v24, %v1406_v14 }
  0xc0   : > { %v1417_v54 = vsel %vm4000_vm3, %v1412_v51, %v1416_v63  ;;  %v3132_v26 = vcombine.low %v2452_v61, %v2455_v13  ;;  %v3133_v55 = vcombine.low %v2459_v18, %v2462_v60  ;;  %v3125_v48 = vrot.slane %v4594_v6, 9 }
  0xc1   : > { %v1435_v52 = vor.u32 %v1434_v12, %v1430_v31  ;;  %v2467_v19 = vrot.slane %v2465_v22, 4  ;;  %v2468_v28 = vrot.slane %v4732_v35, 5  ;;  %v3023_v38 = vcombine.low %v1407_v15, %v1417_v54 }
  0xc2   : > { %v1426_v30 = vrot.slane %v1425_v0, 4  ;;  %v1440_v47 = vrot.slane %v1438_v29, 5  ;;  %v2466_v33 = vsel %vm4161_vm7, %v3125_v48, %v2465_v22 }
  0xc3   : > { %v1436_v49 = vrot.slane %v1435_v52, 4  ;;  %v2469_v6 = vsel %vm4161_vm7, %v2467_v19, %v2468_v28 }
  0xc4   : > { %3399 = vmatmul.mubr.msk.bf16.gmra.mrb[4].mxu0 %vm517_vm4, %v3130_v25  ;;  %v1431_v35 = vsel %vm4000_vm3, %v1426_v30, %v1430_v31 }
  0xc5   : > { %3317 = vmatmul.mubr.msk.bf16.gmra.mrb[12].mxu1 %vm517_vm4, %v3007_v36  ;;  %3402 = vmatprep.mubr.msk.bf16.mxu0 %vm517_vm4, %v3131_v40  ;;  %v1441_v9 = vsel %vm4000_vm3, %v1436_v49, %v1440_v47  ;;  %v3134_v36 = vcombine.low %v2466_v33, %v2469_v6 }
  0xc6   : > { %3330 = vmatprep.mubr.msk.bf16.mxu1 %vm517_vm4, %v3021_v5  ;;  %v3024_v21 = vcombine.low %v1431_v35, %v1441_v9 }
  0xcc   : > { %3403 = vmatmul.mubr.msk.bf16.gmra.mrb[8].mxu0 %vm517_vm4, %v3132_v26 }
  0xcd   : > { %3331 = vmatmul.mubr.msk.bf16.vlgmr.msra.gmra.mrb[8].mxu1 %vm517_vm4, %v4792_v16  ;;  %3406 = vmatprep.mubr.msk.bf16.mxu0 %vm517_vm4, %v3133_v55 }
  0xce   : > { %3334 = vmatprep.mubr.msk.bf16.mxu1 %vm517_vm4, %v3023_v38 }
  0xd4   : > { %3407 = vmatmul.mubr.msk.bf16.gmra.mrb[12].mxu0 %vm517_vm4, %v3134_v36 }
  0xd5   : > { %3335 = vmatmul.mubr.msk.bf16.gmra.mrb[12].mxu1 %vm517_vm4, %v3024_v21 }
 0x180   : > { %v3306_v16 = vpop.f32.mrb[0].mxu1 }
 0x181   : > { %v1171_v59 = vpop.f32.mrb[1].mxu1 }
 0x182   : > { %v3307_v14 = vpop.f32.mrb[2].mxu1 }
 0x183   : > { %v1174_v37 = vpop.f32.mrb[3].mxu1 }
 0x188   : > { %v3310_v3 = vpop.f32.mrb[4].mxu1 }
 0x189   : > { %v1187_v4 = vpop.f32.mrb[5].mxu1 }
 0x18a   : > { %v3311_v20 = vpop.f32.mrb[6].mxu1 }
 0x18b   : > { %v1190_v42 = vpop.f32.mrb[7].mxu1 }
 0x18f   : > { %v3396_v50 = vpop.f32.mrb[0].mxu0 }
 0x190   : > { %v3471_v17 = vadd.f32 %v3396_v50, %v3306_v16  ;;  %v2557_v46 = vpop.f32.mrb[1].mxu0 }
 0x191   : > { %v3472_v44 = vadd.f32 %v2557_v46, %v1171_v59  ;;  %v3397_v41 = vpop.f32.mrb[2].mxu0 }
 0x192   : > { %v2645_v39 = vmul.f32 %v3471_v17, %v4891_v32  ;;  %v3473_v2 = vadd.f32 %v3397_v41, %v3307_v14  ;;  %v2560_v56 = vpop.f32.mrb[3].mxu0 }
 0x193   : > { %v2643_v25 = vmul.f32 %v3472_v44, %v4891_v32  ;;  %v3474_v43 = vadd.f32 %v2560_v56, %v1174_v37 }
 0x194   : > { %v2646_v8 = vmul.f32 %v3473_v2, %v4891_v32  ;;  %v2668_v40 = vadd.f32 %v4897_v58, %v2645_v39 }
 0x195   : > { %v2666_v57 = vadd.f32 %v4897_v58, %v2643_v25  ;;  %v2644_v7 = vmul.f32 %v3474_v43, %v4891_v32 }
 0x196   : > { %v2669_v53 = vadd.f32 %v4897_v58, %v2646_v8  ;;  %v2684_v31 = vmax.f32 %v2668_v40, 0.0 }
 0x197   : > { %v2667_v34 = vadd.f32 %v4897_v58, %v2644_v7  ;;  %v3400_v45 = vpop.f32.mrb[4].mxu0  ;;  %v2682_v23 = vmax.f32 %v2666_v57, 0.0 }
 0x198   : > { %v3475_v5 = vadd.f32 %v3400_v45, %v3310_v3  ;;  %v2573_v27 = vpop.f32.mrb[5].mxu0  ;;  %v2685_v18 = vmax.f32 %v2669_v53, 0.0 }
 0x199   : > { %v2683_v11 = vmax.f32 %v2667_v34, 0.0  ;;  %v3476_v1 = vadd.f32 %v2573_v27, %v1187_v4  ;;  %v3401_v10 = vpop.f32.mrb[6].mxu0 }
 0x19a   : > { %v3477_v12 = vadd.f32 %v3401_v10, %v3311_v20  ;;  %v2576_v24 = vpop.f32.mrb[7].mxu0  ;;  %v2649_v63 = vmul.f32 %v3475_v5, %v4891_v32 }
 0x19b   : > { %v2699_v51 = vadd.f32 %v2683_v11, %v2682_v23  ;;  %v2647_v61 = vmul.f32 %v3476_v1, %v4891_v32  ;;  %v3478_v13 = vadd.f32 %v2576_v24, %v1190_v42 }
 0x19c   : > { %v2650_v0 = vmul.f32 %v3477_v12, %v4891_v32  ;;  %v2672_v62 = vadd.f32 %v4897_v58, %v2649_v63 }
 0x19d   : > { %v2700_v22 = vadd.f32 %v2699_v51, %v2684_v31  ;;  %v2670_v60 = vadd.f32 %v4897_v58, %v2647_v61  ;;  %v2648_v52 = vmul.f32 %v3478_v13, %v4891_v32 }
 0x19e   : > { %v2673_v28 = vadd.f32 %v4897_v58, %v2650_v0  ;;  %v2688_v9 = vmax.f32 %v2672_v62, 0.0 }
 0x19f   : > { %v2686_v29 = vmax.f32 %v2670_v60, 0.0  ;;  %v2701_v15 = vadd.f32 %v2700_v22, %v2685_v18  ;;  %v2671_v54 = vadd.f32 %v4897_v58, %v2648_v52  ;;  %v3404_v26 = vpop.f32.mrb[8].mxu0 }
 0x1a0   : > { %v3332_v55 = vpop.f32.mrb[8].mxu1  ;;  %v2589_v48 = vpop.f32.mrb[9].mxu0  ;;  %v2689_v3 = vmax.f32 %v2673_v28, 0.0 }
 0x1a1   : > { %v2702_v19 = vadd.f32 %v2701_v15, %v2686_v29  ;;  %v2687_v38 = vmax.f32 %v2671_v54, 0.0  ;;  %v3479_v30 = vadd.f32 %v3404_v26, %v3332_v55  ;;  %v1561_v49 = vpop.f32.mrb[9].mxu1  ;;  %v3405_v47 = vpop.f32.mrb[10].mxu0 }
 0x1a2   : > { %v3480_v33 = vadd.f32 %v2589_v48, %v1561_v49  ;;  %v3333_v6 = vpop.f32.mrb[10].mxu1  ;;  %v2592_v35 = vpop.f32.mrb[11].mxu0 }
 0x1a3   : > { %v2703_v36 = vadd.f32 %v2702_v19, %v2687_v38  ;;  %v2653_v21 = vmul.f32 %v3479_v30, %v4891_v32  ;;  %v3481_v16 = vadd.f32 %v3405_v47, %v3333_v6  ;;  %v1564_v59 = vpop.f32.mrb[11].mxu1  ;;  %v2698_v30 = vld [vmem:[#allocation2] sm:$0x1]  ;;  %v2730_v6 = vld [vmem:[%s5041_s4 + $0x10] sm:$0xff] (!%p3145_p0) }
 0x1a4   : > { %v2651_v14 = vmul.f32 %v3480_v33, %v4891_v32  ;;  %v3482_v37 = vadd.f32 %v2592_v35, %v1564_v59  ;;  %v2729_v33 = vld [vmem:[%s5041_s4 + $0x8] sm:$0xff] (!%p3145_p0)  ;;  %v3815_v35 = vmov (!%p3145_p0), 0.0|0.0   ;;  %v2732_v59 = vld [vmem:[%s5041_s4 + $0x20] sm:$0xff] (!%p3145_p0) }
 0x1a5   : > { %v2704_v4 = vadd.f32 %v2703_v36, %v2688_v9  ;;  %v2654_v20 = vmul.f32 %v3481_v16, %v4891_v32  ;;  %v2676_v17 = vadd.f32 %v4897_v58, %v2653_v21  ;;  %3445 = vmatprep.subr.bf16.mxu0 (!%p3145_p0), %v3815_v35  ;;  %v2731_v36 = vld [vmem:[%s5041_s4 + $0x18] sm:$0xff] (!%p3145_p0)  ;;  %v3817_v21 = vmov (!%p3145_p0), 0.0  }
 0x1a6   : > { %v2674_v42 = vadd.f32 %v4897_v58, %v2651_v14  ;;  %v2652_v50 = vmul.f32 %v3482_v37, %v4891_v32  ;;  %3442 = vmatprep.mubr.msk.f32.mxu0 (!%p3145_p0), %vm3816_vm8, %v3817_v21  ;;  %v3449_v16 = vpack.c.bf16 (!%p3145_p0), %v2731_v36, %v2730_v6  ;;  %v2733_v14 = vld [vmem:[%s5041_s4 + $0x28] sm:$0xff] (!%p3145_p0) }
 0x1a7   : > { %v2705_v46 = vadd.f32 %v2704_v4, %v2689_v3  ;;  %v3408_v44 = vpop.f32.mrb[12].mxu0  ;;  %v2677_v25 = vadd.f32 %v4897_v58, %v2654_v20  ;;  %v2692_v5 = vmax.f32 %v2676_v17, 0.0  ;;  %v3452_v37 = vpack.c.bf16 (!%p3145_p0), %v2733_v14, %v2732_v59  ;;  %v2734_v3 = vld [vmem:[%s5041_s4 + $0x30] sm:$0xff] (!%p3145_p0)  ;;  %v2735_v4 = vld [vmem:[%s5041_s4 + $0x38] sm:$0xff] (!%p3145_p0) }
 0x1a8   : > { %v2690_v41 = vmax.f32 %v2674_v42, 0.0  ;;  %v2675_v39 = vadd.f32 %v4897_v58, %v2652_v50  ;;  %v3336_v2 = vpop.f32.mrb[12].mxu1  ;;  %v2605_v56 = vpop.f32.mrb[13].mxu0  ;;  %v3455_v20 = vpack.c.bf16 (!%p3145_p0), %v2735_v4, %v2734_v3  ;;  %v2736_v42 = vld [vmem:[%s5041_s4 + $0x40] sm:$0xff] (!%p3145_p0)  ;;  %v2737_v50 = vld [vmem:[%s5041_s4 + $0x48] sm:$0xff] (!%p3145_p0) }
 0x1a9   : > { %v3483_v43 = vadd.f32 %v3408_v44, %v3336_v2  ;;  %v1577_v8 = vpop.f32.mrb[13].mxu1  ;;  %v3409_v57 = vpop.f32.mrb[14].mxu0  ;;  %v2693_v12 = vmax.f32 %v2677_v25, 0.0  ;;  %v3458_v17 = vpack.c.bf16 (!%p3145_p0), %v2737_v50, %v2736_v42  ;;  %v2739_v44 = vld [vmem:[%s5041_s4 + $0x58] sm:$0xff] (!%p3145_p0)  ;;  %v2741_v2 = vld [vmem:[%s5041_s4 + $0x68] sm:$0xff] (!%p3145_p0)  ;;  %v2742_v25 = vld [vmem:[%s5041_s4 + $0x70] sm:$0xff] (!%p3145_p0) }
 0x1aa   : > { %v2706_v7 = vadd.f32 %v2705_v46, %v2690_v41  ;;  %v2691_v40 = vmax.f32 %v2675_v39, 0.0  ;;  %v3484_v34 = vadd.f32 %v2605_v56, %v1577_v8  ;;  %v3337_v45 = vpop.f32.mrb[14].mxu1  ;;  %v2608_v53 = vpop.f32.mrb[15].mxu0  ;;  %v2738_v46 = vld [vmem:[%s5041_s4 + $0x50] sm:$0xff] (!%p3145_p0)  ;;  %v2740_v39 = vld [vmem:[%s5041_s4 + $0x60] sm:$0xff] (!%p3145_p0) }
 0x1ab   : > { %v3485_v27 = vadd.f32 %v3409_v57, %v3337_v45  ;;  %v1580_v23 = vpop.f32.mrb[15].mxu1  ;;  %v2657_v1 = vmul.f32 %v3483_v43, %v4891_v32  ;;  %v3461_v41 = vpack.c.bf16 (!%p3145_p0), %v2739_v44, %v2738_v46  ;;  %v3464_v56 = vpack.c.bf16 (!%p3145_p0), %v2741_v2, %v2740_v39  ;;  %v2743_v43 = vld [vmem:[%s5041_s4 + $0x78] sm:$0xff] (!%p3145_p0) }
 0x1ac   : > { %v2707_v11 = vadd.f32 %v2706_v7, %v2691_v40  ;;  %v2655_v10 = vmul.f32 %v3484_v34, %v4891_v32  ;;  %v3486_v31 = vadd.f32 %v2608_v53, %v1580_v23  ;;  %v3467_v8 = vpack.c.bf16 (!%p3145_p0), %v2743_v43, %v2742_v25  ;;  %v2744_v40 = vld [vmem:[%s5042_s5] sm:$0x1] (!%p3145_p0) }
 0x1ad   : > { %v2658_v63 = vmul.f32 %v3485_v27, %v4891_v32  ;;  %v2680_v13 = vadd.f32 %v4897_v58, %v2657_v1 }
 0x1ae   : > { %v2708_v24 = vadd.f32 %v2707_v11, %v2692_v5  ;;  %v2678_v51 = vadd.f32 %v4897_v58, %v2655_v10  ;;  %v2656_v61 = vmul.f32 %v3486_v31, %v4891_v32 }
 0x1af   : > { %v2681_v52 = vadd.f32 %v4897_v58, %v2658_v63  ;;  %v2696_v29 = vmax.f32 %v2680_v13, 0.0 }
 0x1b0   : > { %v2694_v18 = vmax.f32 %v2678_v51, 0.0  ;;  %v2709_v22 = vadd.f32 %v2708_v24, %v2693_v12  ;;  %v2679_v60 = vadd.f32 %v4897_v58, %v2656_v61  ;;  %v2728_v58 = vld [vmem:[%s5041_s4] sm:$0xff] (!%p3145_p0) }
 0x1b1   : > { %v2697_v54 = vmax.f32 %v2681_v52, 0.0  ;;  %v3446_v9 = vpack.c.bf16 (!%p3145_p0), %v2729_v33, %v2728_v58 }
 0x1b2   : > { %v2710_v0 = vadd.f32 %v2709_v22, %v2694_v18  ;;  %v2695_v62 = vmax.f32 %v2679_v60, 0.0 }
 0x1b3   : > { %3447 = vmatpush3.bf16.msra.mxu0 (!%p3145_p0), %v3446_v9 }
 0x1b4   : > { %v2711_v15 = vadd.f32 %v2710_v0, %v2695_v62  ;;  %3448 = vmatprep.subr.bf16.mxu0 (!%p3145_p0), %v3815_v35 }
 0x1b6   : > { %v2712_v26 = vadd.f32 %v2711_v15, %v2696_v29 }
 0x1b7   : > { %3450 = vmatpush3.bf16.msra.mxu0 (!%p3145_p0), %v3449_v16 }
 0x1b8   : > { %v2713_v55 = vadd.f32 %v2712_v26, %v2697_v54  ;;  %3451 = vmatprep.subr.bf16.mxu0 (!%p3145_p0), %v3815_v35 }
 0x1ba   : > { %v2714_v48 = vrot.slane %v2713_v55, 4 }
 0x1bb   : > { %3453 = vmatpush3.bf16.msra.mxu0 (!%p3145_p0), %v3452_v37 }
 0x1bc   : > { %v2715_v19 = vadd.f32 %v2714_v48, %v2713_v55  ;;  %3454 = vmatprep.subr.bf16.mxu0 (!%p3145_p0), %v3815_v35 }
 0x1be   : > { %v2716_v28 = vrot.slane %v2715_v19, 2 }
 0x1bf   : > { %3456 = vmatpush3.bf16.msra.mxu0 (!%p3145_p0), %v3455_v20 }
 0x1c0   : > { %v2717_v38 = vadd.f32 %v2716_v28, %v2715_v19  ;;  %3457 = vmatprep.subr.bf16.mxu0 (!%p3145_p0), %v3815_v35 }
 0x1c2   : > { %v2718_v32 = vrot.slane %v2717_v38, 1  ;;  %2725 = sbr.rel (%p3145_p0) target bundleno = 681 (0x2a9), region = 52 }
 0x1c3   : > { %3459 = vmatpush3.bf16.msra.mxu0 (!%p3145_p0), %v3458_v17 }
 0x1c4   : > { %v2719_v49 = vadd.f32 %v2718_v32, %v2717_v38  ;;  %3460 = vmatprep.subr.bf16.mxu0 (!%p3145_p0), %v3815_v35 }
 0x1c6   : > { %v2720_v47 = vadd.f32 %v2719_v49, %v2698_v30 }
 0x1c7   : > { %3462 = vmatpush3.bf16.msra.mxu0 (!%p3145_p0), %v3461_v41 }
 0x1c8   : > { %2721 = vst [vmem:[#allocation2] sm:$0x1] %v2720_v47  ;;  %3463 = vmatprep.subr.bf16.mxu0 (!%p3145_p0), %v3815_v35 }
 0x1cb   : > { %3465 = vmatpush3.bf16.msra.mxu0 %v3464_v56 }
 0x1cc   : > { %3466 = vmatprep.subr.bf16.mxu0 %v3815_v35 }
 0x1cf   : > { %v2726_v57 = vld [vmem:[#allocation2] sm:$0x1]  ;;  %3468 = vmatpush3.bf16.msra.mxu0 %v3467_v8 }
 0x1d0   : > { %v2727_v7 = vmul.f32 0.00390625, %v2726_v57 }
 0x1d2   : > { %3443 = vmatmul.mubr.f32.vlgmr.msra.gmra.mrb[0].mxu0 %v2727_v7 }
 0x2a5   : > { %v2811_v34 = vpop.f32.mrb[0].mxu0 }
 0x2a6   : > { %v2812_v45 = vadd.f32 %v2811_v34, %v2744_v40  ;;  %v3444_v53 = vpop.f32.mrb[1].mxu0 }
 0x2a8   : > { %2815 = vst [vmem:[%s3931_s20] sm:$0x1] %v2812_v45 }
 0x2a9 PF: > { %s3146_s15 = sshll.u32 %s3800_s25, 4  ;;  %s2829_s24 = sshll.u32 %s3931_s20, 4  ;;  %s2830_s24 = int_to_ptr.vmem [resolvable:$true] %s2829_s24 }
 0x2aa   : > { %s4987_s18 = scalar_lea.hbm %s5043_s6, %s3146_s15  ;;  %s2817_s29 = scalar_lea.sflag [#allocation4], %s254_s14 }
 0x2ab   : > { %s3718_s30 = scalar_lea.vmem %s2830_s24, 16  ;;  %s3818_s19 = smov [#allocation3]  }
 0x2ac   : > { %p3719_p1 = scmp.ne.s32.totalorder %s2830_s24, %s3718_s30  ;;  %s3722_s11 = sshll.u32 %s3818_s19, 4  ;;  %s3723_s11 = int_to_ptr.vmem [resolvable:$false] %s3722_s11 }
 0x2ad   : > { %s3724_s12 = scalar_lea.vmem %s3723_s11, 32  ;;  %p3725_p5 = scmp.lt.s32.totalorder %s2830_s24, %s3723_s11 }
 0x2ae   : > { %p3720_p2 = pnand %p3719_p1, %p3903_p3  ;;  %p3726_p6 = scmp.lt.s32.totalorder %s3724_s12, %s3718_s30 }
 0x2b0   : > { %p3721_p4 = pneg %p3720_p2  ;;  %p3727_p7 = por %p3726_p6, %p3725_p5 }
 0x2b2   : > { %p3728_p8 = pnand %p3727_p7, %p3721_p4 }
 0x2b4   : > { %3731 = shalt.err (!%p3728_p8)
}
 0x2b5   : > { %s3732_s25 = scalar_lea.hbm %s4987_s18, 16  ;;  %s3736_s15 = scalar_lea.hbm %s5043_s6, 32 }
 0x2b6   : > { %p3733_p10 = scmp.ne.s32.totalorder %s4987_s18, %s3732_s25  ;;  %p3737_p13 = scmp.lt.u32.totalorder %s4987_s18, %s5043_s6 }
 0x2b7   : > { %p3738_p0 = scmp.lt.u32.totalorder %s3736_s15, %s3732_s25  ;;  %p3740_p2 = scmp.lt.u32.totalorder %s3732_s25, %s4987_s18 }
 0x2b8   : > { %p3734_p11 = pnand %p3733_p10, %p3903_p3 }
 0x2b9   : > { %p3739_p1 = por %p3738_p0, %p3737_p13 }
 0x2ba   : > { %p3735_p12 = pneg %p3734_p11 }
 0x2bb   : > { %p3741_p4 = por %p3740_p2, %p3739_p1 }
 0x2bd   : > { %p3742_p5 = pnand %p3741_p4, %p3735_p12 }
 0x2bf   : > { %3745 = shalt.err (!%p3742_p5)
}
 0x2c0   : > { %3610 = dma.vmem_to_hbm [thread:$0]  (%p3903_p3), %s2830_s24, 16, %s4987_s18, %s2817_s29  }
 0x2c1 PF: > { %p3616_p6 = scmp.ge.s32.totalorder %s3812_s28, 2  ;;  %s2841_s30 = sand.u32 1, %s3784_s21  }
 0x2c2   : > { %s2842_s19 = scalar_lea.sflag [#allocation4], %s2841_s30 }
 0x2c3   : > { %p3613_p7 = pnand %p3616_p6, %p3913_p9 }
 0x2c5   : > { %3779 = dma.done.wait (!%p3613_p7), %s2842_s19, 16  }
 0x2c6   : > { %3781 = vsyncadd (!%p3613_p7), %s2842_s19, 4294967280  ;;  %s19_s28 = sadd.s32 1, %s3812_s28   ;;  %s5116_s21 = smov %s3788_s22 }
 0x2c7   : > { %p16_p8 = scmp.ge.s32.totalorder %s19_s28, 6   ;;  %s5117_s22 = smov %s3792_s23 }
 0x2c8   : > { %s5118_s23 = smov %s3921_s13  ;;  %s5119_s24 = smov %s3804_s26 }
 0x2c9   : > { %s5120_s25 = smov %s3808_s27  ;;  %s5121_s26 = smov %s5124_s7 }
 0x2ca   : > { %s5122_s27 = smov %s5128_s8  ;;  %18 = sbr.rel (!%p16_p8) target bundleno = 5 (0x5), region = 98 }
 0x2d1   :  { %2846 = vsyncpa [#allocation4], 1 }
 0x2d2   :  { %2848 = vsyncpa [#allocation4 + $0x1], 1 }

</bundles_post_ra>
